<compile_context>
chip_gen: v7x
topology: tpu7x:2x2x1
jax: 0.10.0
libtpu: 0.0.40
codegen_flags: <defaults>
</compile_context>

<pallas_src>
import jax
import jax.numpy as jnp
from jax.experimental import pallas as pl
from jax.experimental.pallas import tpu as pltpu


def linear_kernel(x_ref, w_ref, b_ref, o_ref):
    # Single dot over the full K=2048 (bf16 operands, f32 accumulate); bias added in f32.
    o_ref[...] = (
        jnp.dot(x_ref[...], w_ref[...], preferred_element_type=jnp.float32)
        + b_ref[...]
    ).astype(o_ref.dtype)


def prepare_params(weight, bias):
    """One-time parameter prep (hoisted out of the forward path — do NOT call per step).

    weight: (num_classes, 2048) float32, PyTorch nn.Linear layout.
    bias:   (num_classes,)      float32.
    Returns (w_pad, b_pad, num_classes) with W transposed to (2048, N_pad) bf16 and
    bias as (1, N_pad) f32, N_pad rounded up to a multiple of 128 (lane-dense output).
    """
    n, k = weight.shape
    n_pad = ((n + 127) // 128) * 128
    w = jnp.pad(jnp.transpose(weight), ((0, 0), (0, n_pad - n)))
    b = jnp.pad(bias.reshape(1, n), ((0, 0), (0, n_pad - n)))
    return w.astype(jnp.bfloat16), b.astype(jnp.float32), n


def cos_softmax_module_forward(mem_feat, w_pad, b_pad, num_classes,
                               *, tile_m=512, force_pallas=False):
    """Pallas implementation of CosSoftmaxModule.forward (the sp_Acls linear).

    mem_feat: (M, 2048) float32
    w_pad:    (2048, N_pad) bfloat16   (from prepare_params)
    b_pad:    (1, N_pad) float32       (from prepare_params)
    returns:  (M, num_classes) float32
    """
    M, K = mem_feat.shape
    Kw, N_pad = w_pad.shape
    assert K == Kw and b_pad.shape == (1, N_pad) and num_classes <= N_pad

    # Tiny-problem fast path: launch overhead + weight DMA dominate; XLA's fused
    # dot+add matches or beats a custom kernel here.
    if not force_pallas and M <= 64 and N_pad <= 128:
        out = jnp.dot(mem_feat, w_pad[:, :num_classes].astype(jnp.float32),
                      preferred_element_type=jnp.float32)
        return out + b_pad[:, :num_classes]

    # Batch tiling: at least 2 tiles once M >= 16 so ("parallel", ...) can shard the
    # grid across v7x's two TensorCores; cap at tile_m (512 amortizes the ~0.35us
    # per-step pipeline overhead on v6e/v5e); sublane-aligned to 8.
    tm = min(tile_m, max(8, ((pl.cdiv(M, 2) + 7) // 8) * 8))
    grid_m = pl.cdiv(M, tm)  # partial last block handled by Pallas (no jnp.pad of x)

    # N tiling only once the resident bf16 weight stops fitting comfortably in VMEM
    # (2048 x 2048 bf16 tile = 8 MiB). For typical class counts grid_n == 1.
    tn = min(N_pad, 2048)
    grid_n = pl.cdiv(N_pad, tn)

    # Grid-invariant operands: single buffer — no dead double-buffer copy of W/bias.
    invariant = pl.Buffered(buffer_count=1) if grid_n == 1 else None

    # Halves the x HBM stream; under jit this cast fuses with the upstream producer.
    x = mem_feat.astype(jnp.bfloat16)

    cost = pl.CostEstimate(
        flops=2 * M * K * N_pad,
        transcendentals=0,
        bytes_accessed=M * K * 2 + K * N_pad * 2 + N_pad * 4 + M * N_pad * 4,
    )

    # Explicit scoped-VMEM budget (x double buffer + W + bias + out double buffer),
    # with headroom; matters on v5e's 16 MiB default scoped limit for big tiles.
    vmem_bytes = (2 * tm * K * 2
                  + (1 if grid_n == 1 else 2) * K * tn * 2
                  + 2 * tn * 4
                  + 2 * tm * tn * 4)
    vmem_limit = min(64 * 1024 * 1024, max(16 * 1024 * 1024, 2 * vmem_bytes))

    out = pl.pallas_call(
        linear_kernel,
        out_shape=jax.ShapeDtypeStruct((M, N_pad), jnp.float32),
        grid_spec=pltpu.PrefetchScalarGridSpec(
            num_scalar_prefetch=0,
            grid=(grid_m, grid_n),
            in_specs=[
                pl.BlockSpec((tm, K), lambda i, j: (i, 0)),          # x: rows tiled, full K
                pl.BlockSpec((K, tn), lambda i, j: (0, j),           # W: resident / N-tiled
                             pipeline_mode=invariant),
                pl.BlockSpec((1, tn), lambda i, j: (0, j),           # bias: resident
                             pipeline_mode=invariant),
            ],
            out_specs=pl.BlockSpec((tm, tn), lambda i, j: (i, j)),
        ),
        compiler_params=pltpu.CompilerParams(
            dimension_semantics=("parallel", "parallel"),
            vmem_limit_bytes=vmem_limit,
        ),
        cost_estimate=cost,
    )(x, w_pad, b_pad)

    # Padded lanes (and any masked partial-M rows) never leave this slice.
    return out[:, :num_classes]


if __name__ == "__main__":
    in_features = 2048   # fixed by the module (nn.Linear(2048, numcls))
    num_classes = 16     # config.numcls

    key = jax.random.PRNGKey(0)
    k_x, k_w, k_b, k_x2 = jax.random.split(key, 4)

    # Deterministic synthetic parameters in PyTorch layout: (out_features, in_features).
    weight = jax.random.normal(k_w, (num_classes, in_features), dtype=jnp.float32) * 0.02
    bias = jax.random.normal(k_b, (num_classes,), dtype=jnp.float32) * 0.01

    # One-time parameter prep (padding/cast hoisted out of the forward path).
    w_pad, b_pad, n_out = prepare_params(weight, bias)

    # --- Pallas path: batch not a multiple of the tile (exercises partial-block masking).
    batch = 200
    mem_feat = jax.random.normal(k_x, (batch, in_features), dtype=jnp.float32)
    out = cos_softmax_module_forward(mem_feat, w_pad, b_pad, n_out, force_pallas=True)
    out = jax.block_until_ready(out)
    ref = mem_feat @ weight.T + bias
    assert out.shape == (batch, num_classes)
    err = float(jnp.max(jnp.abs(out - ref)))
    assert jnp.allclose(out, ref, atol=5e-2, rtol=5e-2), f"max abs err {err}"  # bf16 operands

    # --- Small-batch auto dispatch (fast path: fused XLA dot + bias).
    small = jax.random.normal(k_x2, (8, in_features), dtype=jnp.float32)
    out_s = jax.block_until_ready(cos_softmax_module_forward(small, w_pad, b_pad, n_out))
    ref_s = small @ weight.T + bias
    assert out_s.shape == (8, num_classes)
    assert jnp.allclose(out_s, ref_s, atol=5e-2, rtol=5e-2)

    print("KERNEL_OK")
</pallas_src>

<mosaic_0001>
module attributes {stable_mosaic.version = 11 : i64} {
  func.func @linear_kernel(%arg0: i32, %arg1: i32, %arg2: memref<104x2048xbf16, #tpu.memory_space<vmem>>, %arg3: memref<2048x128xbf16, #tpu.memory_space<vmem>>, %arg4: memref<1x128xf32, #tpu.memory_space<vmem>>, %arg5: memref<104x128xf32, #tpu.memory_space<vmem>>) attributes {dimension_semantics = [#tpu.dimension_semantics<parallel>, #tpu.dimension_semantics<parallel>], iteration_bounds = array<i64: 2, 1>, scalar_prefetch = 0 : i64, scratch_operands = 0 : i64, tpu.core_type = #tpu.core_type<tc>, window_params = [{transform_indices = @transform_0, window_bounds = array<i64: 104, 2048>}, {pipeline_mode = #tpu.pipeline_mode<synchronous>, transform_indices = @transform_1, window_bounds = array<i64: 2048, 128>}, {pipeline_mode = #tpu.pipeline_mode<synchronous>, transform_indices = @transform_2, window_bounds = array<i64: 1, 128>}, {transform_indices = @transform_3, window_bounds = array<i64: 104, 128>}]} {
    %c0 = arith.constant 0 : index
    %c0_0 = arith.constant 0 : index
    %0 = vector.load %arg2[%c0, %c0_0] : memref<104x2048xbf16, #tpu.memory_space<vmem>>, vector<104x2048xbf16>
    %c0_1 = arith.constant 0 : index
    %c0_2 = arith.constant 0 : index
    %1 = vector.load %arg3[%c0_1, %c0_2] : memref<2048x128xbf16, #tpu.memory_space<vmem>>, vector<2048x128xbf16>
    %cst = arith.constant dense<0.000000e+00> : vector<104x128xf32>
    %2 = tpu.matmul %0, %1, %cst {dimension_numbers = #tpu.dot_dimension_numbers<[1], [0], [0], [1], [0, 0, 1, 1], [], []>} : vector<104x2048xbf16>, vector<2048x128xbf16>, vector<104x128xf32> -> vector<104x128xf32>
    %c0_3 = arith.constant 0 : index
    %c0_4 = arith.constant 0 : index
    %3 = vector.load %arg4[%c0_3, %c0_4] : memref<1x128xf32, #tpu.memory_space<vmem>>, vector<1x128xf32>
    %4 = vector.broadcast %3 : vector<1x128xf32> to vector<104x128xf32>
    %5 = arith.addf %2, %4 : vector<104x128xf32>
    %c0_5 = arith.constant 0 : index
    %c0_6 = arith.constant 0 : index
    %6 = vector.load %arg5[%c0_5, %c0_6] : memref<104x128xf32, #tpu.memory_space<vmem>>, vector<104x128xf32>
    tpu.vector_store %arg5[%c0_5, %c0_6], %5 {strides = array<i32>} : memref<104x128xf32, #tpu.memory_space<vmem>>, vector<104x128xf32>,
    return
  }
  func.func @transform_0(%arg0: i32, %arg1: i32) -> (i32, i32) {
    %c0_i32 = arith.constant 0 : i32
    %c0_i32_0 = arith.constant 0 : i32
    return %arg0, %c0_i32 : i32, i32
  }
  func.func @transform_1(%arg0: i32, %arg1: i32) -> (i32, i32) {
    %c0_i32 = arith.constant 0 : i32
    %c0_i32_0 = arith.constant 0 : i32
    return %c0_i32, %arg1 : i32, i32
  }
  func.func @transform_2(%arg0: i32, %arg1: i32) -> (i32, i32) {
    %c0_i32 = arith.constant 0 : i32
    %c0_i32_0 = arith.constant 0 : i32
    return %c0_i32, %arg1 : i32, i32
  }
  func.func @transform_3(%arg0: i32, %arg1: i32) -> (i32, i32) {
    %c0_i32 = arith.constant 0 : i32
    return %arg0, %arg1 : i32, i32
  }
}

</mosaic_0001>

<bundles_post_ra>
// kernel: tpu_custom_call.1
= control target key start
LH: loop header
LB: loop body
LE: loop exit
PB: predicated region body
PF: predicated region fallthrough
CT: control target
= control target key end

     0   :  { %8 = vsyncpa [#allocation3], 0  ;;  %s4384_s0 = inlined_call_operand.hbm [shape: bf16[200,2048], index: 0, kind: input, shape index: {}]   ;;  %s4385_s1 = inlined_call_operand.hbm [shape: bf16[2048,128], index: 1, kind: input, shape index: {}]   ;;  %s4386_s2 = inlined_call_operand.vmem [shape: f32[1,128], index: 2, kind: input, shape index: {}]   ;;  %s4387_s3 = inlined_call_operand.hbm [shape: f32[200,128], index: 3, kind: output, shape index: {}]  }
   0x1   :  { %10 = vsyncpa [#allocation3 + $0x1], 0 }
   0x2   :  { %11 = vsyncpa [#allocation6], 0 }
   0x3   :  { %12 = vsyncpa [#allocation4], 0 }
   0x4   :  { %14 = vsyncpa [#allocation4 + $0x1], 0  ;;  %s3899_s12 = smov 0   ;;  %s3901_s13 = smov 0  }
   0x5   :  { %s3903_s14 = smov 0   ;;  %s3905_s15 = smov 0  }
   0x6   :  { %s3907_s16 = smov 0   ;;  %s3909_s17 = smov 0  }
   0x7 LB: > { %s2775_s18 = sadd.s32 4294967295, %s3868_s17   ;;  %s2776_s19 = sadd.s32 4294967294, %s3868_s17   ;;  %s3868_s17 = sphi %s3909_s17, %s20_s17   ;;  %s3864_s16 = sphi %s3907_s16, %s4409_s16   ;;  %s3860_s15 = sphi %s3905_s15, %s4408_s15   ;;  %s3856_s14 = sphi %s3903_s14, %s4407_s14   ;;  %s3852_s13 = sphi %s3901_s13, %s4406_s13   ;;  %s3848_s12 = sphi %s3899_s12, %s4405_s12  }
   0x8   : > { %s32_s20 = sadd.s32 1, %s3864_s16  ;;  %s39_s21 = sadd.s32 1, %s3856_s14 }
   0x9   : > { %p34_p0 = scmp.ge.s32.totalorder %s32_s20, 2  ;;  %p46_p1 = scmp.ne.s32.totalorder %s3856_s14, %s3852_s13 }
   0xa   : > { %p47_p2 = scmp.eq.s32.totalorder %s3868_s17, 0  ;;  %p52_p3 = scmp.ne.s32.totalorder %s3852_s13, %s3848_s12 }
   0xb   : > { %s4411_s20 = smov (%p34_p0, %s32_s20), 0  ;;  %p3944_p5 = scmp.eq.s32.totalorder %s2775_s18, 0 }
   0xc   : > { %p3940_p4 = por %p47_p2, %p46_p1  ;;  %s36_s24 = ssub.s32 %s3864_s16, %s4411_s20 }
   0xd   : > { %s4393_s23 = scalar_select %p3944_p5, 1, 0 }
   0xe   : > { %s4392_s22 = scalar_select %p3940_p4, 1, 0 }
   0xf   : > { %p130_p6 = scmp.eq.s32.totalorder %s2775_s18, 1  ;;  %p37_p7 = scmp.eq.s32.totalorder %s36_s24, 0 }
  0x10   : > { %p3952_p8 = por %p3944_p5, %p52_p3  ;;  %p136_p10 = scmp.eq.s32.totalorder %s2776_s19, 1 }
  0x11   : > { %p3956_p9 = por %p130_p6, %p46_p1  ;;  %p2777_p12 = scmp.ge.s32.totalorder %s3868_s17, 1 }
  0x12   : > { %s4394_s25 = scalar_select %p3952_p8, 1, 0 }
  0x13   : > { %s4395_s26 = scalar_select %p3956_p9, 1, 0 }
  0x14   : > { %s3961_s27 = scalar_select %p37_p7, %s3856_s14, %s39_s21  }
  0x15   : > { %p3963_p11 = por %p136_p10, %p52_p3  ;;  %p143_p13 = scmp.lt.s32.totalorder %s3868_s17, 3 }
  0x16   : > { %s3870_s30 = smov [#allocation5]   ;;  %s3726_s8 = scalar_lea.hbm %s4385_s1, 16384 }
  0x17   : > { %s4396_s28 = scalar_select %p3963_p11, 1, 0 }
  0x18   : > { %p3969_p0 = pnand %p2777_p12, %p143_p13  ;;  %s157_s4 = sshll.u32 %s3870_s30, 4  ;;  %s158_s4 = int_to_ptr.vmem [resolvable:$true] %s157_s4 }
  0x19   : > { %p3727_p3 = scmp.ne.s32.totalorder %s4385_s1, %s3726_s8  ;;  %p3733_p12 = scmp.lt.u32.totalorder %s3726_s8, %s4385_s1 }
  0x1a   : > { %s4397_s29 = scalar_select %p3969_p0, 1, 0 }
  0x1b   : > { %p3516_p1 = pneg %p3969_p0 }
  0x1d   : > { %p3977_p2 = pnand %p3516_p1, %p3944_p5 }
  0x1f   : > { %p3728_p6 = pneg %p3977_p2 }
  0x21   : > { %p3729_p7 = pnand %p3728_p6, %p3727_p3 }
  0x23   : > { %p3730_p10 = pneg %p3729_p7 }
  0x25   : > { %p3735_p13 = pnand %p3733_p12, %p3730_p10 }
  0x27   : > { %3738 = shalt.err (!%p3735_p13)
}
  0x28   : > { %s3739_s19 = scalar_lea.vmem %s158_s4, 16384  ;;  %p3747_p5 = scmp.lt.s32.totalorder %s158_s4, %s158_s4 }
  0x29   : > { %p3740_p1 = scmp.ne.s32.totalorder %s158_s4, %s3739_s19  ;;  %p3748_p8 = scmp.lt.s32.totalorder %s3739_s19, %s3739_s19 }
  0x2b   : > { %p3742_p11 = pnand %p3740_p1, %p3728_p6  ;;  %p3749_p0 = por %p3748_p8, %p3747_p5 }
  0x2d   : > { %p3743_p9 = pneg %p3742_p11 }
  0x2f   : > { %p3750_p4 = pnand %p3749_p0, %p3743_p9 }
  0x31   : > { %3753 = shalt.err (!%p3750_p4)
}
  0x32   : > { %s3871_s21 = smov 64   ;;  %s3872_s24 = smov 4  }
  0x33   : > { %3519 = dma.hbm_to_vmem [thread:$0]  (!%p3977_p2), %s4385_s1, 16384, %s158_s4, [#allocation6], %s3871_s21, %s3871_s21, %s3872_s24  }
  0x34   : > { %p2780_p3 = scmp.ge.s32.totalorder %s3868_s17, 2 }
  0x35   : > { %p4399_p11 = scmp.ne.s32.totalorder (!%p2780_p3), %s4392_s22, 0 }
  0x36   : > { %173 = sbr.rel (%p2780_p3) target bundleno = 96 (0x60), region = 24 }
  0x3d   : > { %176 = sbr.rel (!%p4399_p11) target bundleno = 96 (0x60), region = 28  ;;  %s177_s7 = sand.u32 (%p4399_p11), 1, %s3856_s14  }
  0x3e   : > { %s182_s8 = smul.u32 (%p4399_p11), 13, %s3864_s16  ;;  %s4007_s11 = scalar_lea.sflag (%p4399_p11), [#allocation3], %s177_s7 }
  0x3f   : > { %s3507_s9 = smul.u32 (%p4399_p11), 832, %s177_s7 }
  0x40   : > { %s183_s10 = ssub.s32 (%p4399_p11), 25, %s182_s8 }
  0x41   : > { %p184_p4 = scmp.lt.s32.totalorder (%p4399_p11), %s183_s10, 13  ;;  %s181_s18 = scalar_lea.vmem (%p4399_p11), [#allocation2], %s3507_s9 }
  0x44   : > { %s4413_s10 = smov (!%p184_p4, %s183_s10), 13 }
  0x45   : > { %s4004_s5 = sshll.u32 %s4413_s10, 10 }
  0x46   : > { %s189_s4 = ssub.s32 13312, %s4004_s5 }
  0x47   : > { %190 = vsyncadd %s4007_s11, %s189_s4  ;;  %p2783_p5 = scmp.ne.s32.totalorder %s4004_s5, 0  ;;  %s3042_s22 = smul.u32 13312, %s3864_s16 }
  0x48   : > { %s196_s19 = sshll.u32 %s181_s18, 4  ;;  %s3758_s9 = scalar_lea.hbm %s4384_s0, 25600  ;;  %s4017_s19 = int_to_ptr.vmem [resolvable:$true] %s196_s19 }
  0x49   : > { %s4015_s30 = scalar_lea.hbm %s4384_s0, %s3042_s22 }
  0x4a   : > { %s3754_s6 = scalar_lea.hbm %s4015_s30, %s4004_s5  ;;  %p3759_p2 = scmp.lt.u32.totalorder %s4015_s30, %s4384_s0 }
  0x4b   : > { %p3755_p8 = scmp.ne.s32.totalorder %s4015_s30, %s3754_s6  ;;  %p3760_p6 = scmp.lt.u32.totalorder %s3758_s9, %s3754_s6 }
  0x4c   : > { %p3762_p10 = scmp.lt.u32.totalorder %s3754_s6, %s4015_s30 }
  0x4d   : > { %p3756_p9 = pnand %p3755_p8, %p2783_p5  ;;  %p3761_p7 = por %p3760_p6, %p3759_p2 }
  0x4f   : > { %p3757_p0 = pneg %p3756_p9  ;;  %p3763_p12 = por %p3762_p10, %p3761_p7 }
  0x51   : > { %p3764_p13 = pnand %p3763_p12, %p3757_p0 }
  0x53   : > { %3767 = shalt.err (!%p3764_p13)
}
  0x54   : > { %s3768_s18 = scalar_lea.vmem %s4017_s19, %s4004_s5  ;;  %s3873_s22 = smov [#allocation2]  }
  0x55   : > { %p3769_p1 = scmp.ne.s32.totalorder %s4017_s19, %s3768_s18  ;;  %s3772_s21 = sshll.u32 %s3873_s22, 4  ;;  %s3773_s21 = int_to_ptr.vmem [resolvable:$false] %s3772_s21 }
  0x56   : > { %s3774_s24 = scalar_lea.vmem %s3773_s21, 26624  ;;  %p3775_p8 = scmp.lt.s32.totalorder %s4017_s19, %s3773_s21 }
  0x57   : > { %p3770_p11 = pnand %p3769_p1, %p2783_p5  ;;  %p3776_p9 = scmp.lt.s32.totalorder %s3774_s24, %s3768_s18 }
  0x59   : > { %p3771_p4 = pneg %p3770_p11  ;;  %p3777_p2 = por %p3776_p9, %p3775_p8 }
  0x5b   : > { %p3778_p6 = pnand %p3777_p2, %p3771_p4 }
  0x5d   : > { %3781 = shalt.err (!%p3778_p6)
}
  0x5e   : > { %s3874_s6 = smov 1024   ;;  %s3875_s7 = smov 64  }
  0x5f   : > { %202 = dma.hbm_to_vmem [thread:$0]  (%p2783_p5), %s4015_s30, %s4004_s5, %s4017_s19, %s4007_s11, %s3874_s6, %s3874_s6, %s3875_s7  }
  0x60 PF: > { %p4400_p0 = scmp.ne.s32.totalorder %s4397_s29, 0 }
  0x61   : > { %s4047_s8 = sand.u32 (!%p4400_p0), 1, %s3852_s13   ;;  %p4401_p7 = scmp.ne.s32.totalorder (!%p4400_p0), %s4394_s25, 0 }
  0x62   : > { %208 = sbr.rel (%p4400_p0) target bundleno = 607 (0x25f), region = 32  ;;  %s211_s10 = scalar_lea.sflag (!%p4400_p0), [#allocation3], %s4047_s8 }
  0x63   : > { %s3508_s9 = smul.u32 (!%p4400_p0), 832, %s4047_s8 }
  0x65   : > { %s4051_s4 = scalar_lea.vmem (!%p4400_p0), [#allocation2], %s3508_s9 }
  0x69   : > { %3835 = dma.done.wait (%p4401_p7), %s211_s10, 13312  }
  0x6a   : > { %3837 = vsyncadd (%p4401_p7), %s211_s10, 4294953984  ;;  %p4402_p5 = scmp.ne.s32.totalorder %s4393_s23, 0 }
  0x6c   : > { %3839 = dma.done.wait (%p4402_p5), [#allocation6], 16384  }
  0x6d   : > { %3841 = vsyncadd (%p4402_p5), [#allocation6], 4294950912  ;;  %v3582_v0 = vld [vmem:[#allocation5 + $0x40] sm:$0xff]   ;;  %v3586_v4 = vld [vmem:[#allocation5 + $0x48] sm:$0xff]   ;;  %s3509_s29 = smul.u32 104, %s4047_s8  ;;  %s2648_s11 = scalar_lea.sflag [#allocation4], %s4047_s8 }
  0x6e   : > { %v3583_v1 = vld [vmem:[#allocation5 + $0xc0] sm:$0xff]   ;;  %3043 = vmatprep.subr.bf16.mxu0 %v3582_v0  ;;  %v3587_v5 = vld [vmem:[#allocation5 + $0xc8] sm:$0xff]   ;;  %v3590_v8 = vld [vmem:[#allocation5 + $0x50] sm:$0xff]   ;;  %p4403_p10 = scmp.ne.s32.totalorder %s4395_s26, 0 }
  0x6f   : > { %v3584_v2 = vld [vmem:[#allocation5] sm:$0xff]   ;;  %3101 = vmatprep.subr.bf16.mxu1 %v3583_v1  ;;  %v3588_v6 = vld [vmem:[#allocation5 + $0x8] sm:$0xff]   ;;  %v3591_v9 = vld [vmem:[#allocation5 + $0xd0] sm:$0xff]   ;;  %s4290_s5 = scalar_lea.vmem [#allocation7], %s3509_s29  ;;  %s2655_s19 = smul.u32 (%p4403_p10), 13, %s3860_s15 }
  0x70   : > { %v3585_v3 = vld [vmem:[#allocation5 + $0x80] sm:$0xff]   ;;  %3044 = vmatpush3.bf16.msra.mxu0 %v3584_v2  ;;  %v3589_v7 = vld [vmem:[#allocation5 + $0x88] sm:$0xff]   ;;  %v3592_v10 = vld [vmem:[#allocation5 + $0x10] sm:$0xff]  }
  0x71   : > { %3102 = vmatpush3.bf16.msra.mxu1 %v3585_v3  ;;  %3045 = vmatprep.subr.bf16.mxu0 %v3586_v4  ;;  %v3593_v11 = vld [vmem:[#allocation5 + $0x90] sm:$0xff]   ;;  %v3594_v12 = vld [vmem:[#allocation5 + $0x58] sm:$0xff]   ;;  %v3598_v16 = vld [vmem:[#allocation5 + $0x60] sm:$0xff]   ;;  %s2656_s30 = ssub.s32 (%p4403_p10), 25, %s2655_s19 }
  0x72   : > { %3103 = vmatprep.subr.bf16.mxu1 %v3587_v5  ;;  %v3595_v13 = vld [vmem:[#allocation5 + $0xd8] sm:$0xff]   ;;  %v3599_v17 = vld [vmem:[#allocation5 + $0xe0] sm:$0xff]   ;;  %v3602_v20 = vld [vmem:[#allocation5 + $0x68] sm:$0xff]   ;;  %p2657_p12 = scmp.lt.s32.totalorder (%p4403_p10), %s2656_s30, 13 }
  0x73   : > { %v3596_v14 = vld [vmem:[#allocation5 + $0x18] sm:$0xff]   ;;  %v3600_v18 = vld [vmem:[#allocation5 + $0x20] sm:$0xff]   ;;  %v3603_v21 = vld [vmem:[#allocation5 + $0xe8] sm:$0xff]  }
  0x74   : > { %3046 = vmatpush3.bf16.msra.mxu0 %v3588_v6  ;;  %v3597_v15 = vld [vmem:[#allocation5 + $0x98] sm:$0xff]   ;;  %v3601_v19 = vld [vmem:[#allocation5 + $0xa0] sm:$0xff]   ;;  %v3604_v22 = vld [vmem:[#allocation5 + $0x28] sm:$0xff]  }
  0x75   : > { %3104 = vmatpush3.bf16.msra.mxu1 %v3589_v7  ;;  %3047 = vmatprep.subr.bf16.mxu0 %v3590_v8  ;;  %v3605_v23 = vld [vmem:[#allocation5 + $0xa8] sm:$0xff]   ;;  %v3606_v24 = vld [vmem:[#allocation5 + $0x70] sm:$0xff]   ;;  %v3610_v28 = vld [vmem:[#allocation5 + $0x78] sm:$0xff]  }
  0x76   : > { %3105 = vmatprep.subr.bf16.mxu1 %v3591_v9  ;;  %v3607_v25 = vld [vmem:[#allocation5 + $0xf0] sm:$0xff]   ;;  %v3611_v29 = vld [vmem:[#allocation5 + $0xf8] sm:$0xff]   ;;  %v259_v32 = vld [vmem:[%s4051_s4] sm:$0xff] }
  0x77   : > { %v3608_v26 = vld [vmem:[#allocation5 + $0x30] sm:$0xff]   ;;  %v3612_v30 = vld [vmem:[#allocation5 + $0x38] sm:$0xff]   ;;  %v267_v33 = vld [vmem:[%s4051_s4 + $0x40] sm:$0xff] }
  0x78   : > { %3048 = vmatpush3.bf16.msra.mxu0 %v3592_v10  ;;  %v3609_v27 = vld [vmem:[#allocation5 + $0xb0] sm:$0xff]   ;;  %v3613_v31 = vld [vmem:[#allocation5 + $0xb8] sm:$0xff]   ;;  %v260_v34 = vld [vmem:[%s4051_s4 + $0x8] sm:$0xff]  ;;  %v2791_v35 = vcombine.low %v259_v32, %v267_v33  ;;  %v2792_v36 = vcombine.high %v259_v32, %v267_v33 }
  0x79   : > { %3106 = vmatpush3.bf16.msra.mxu1 %v3593_v11  ;;  %3049 = vmatprep.subr.bf16.mxu0 %v3594_v12  ;;  %v268_v37 = vld [vmem:[%s4051_s4 + $0x48] sm:$0xff]  ;;  %v3614_v40 = vld [vmem:[#allocation5 + $0x140] sm:$0xff]   ;;  %v3622_v56 = vld [vmem:[#allocation5 + $0x150] sm:$0xff]  }
  0x7a   : > { %3107 = vmatprep.subr.bf16.mxu1 %v3595_v13  ;;  %v2793_v38 = vcombine.low %v260_v34, %v268_v37  ;;  %v2794_v39 = vcombine.high %v260_v34, %v268_v37  ;;  %1962 = vmatprep.mubr.bf16.mxu0 %v2792_v36  ;;  %v3615_v41 = vld [vmem:[#allocation5 + $0x100] sm:$0xff]   ;;  %v276_v47 = vld [vmem:[%s4051_s4 + $0x88] sm:$0xff]  ;;  %v3623_v63 = vld [vmem:[#allocation5 + $0x110] sm:$0xff]  }
  0x7b   : > { %v3616_v42 = vld [vmem:[#allocation5 + $0x1c0] sm:$0xff]   ;;  %v284_v48 = vld [vmem:[%s4051_s4 + $0xc8] sm:$0xff]  ;;  %v3624_v0 = vld [vmem:[#allocation5 + $0x1d0] sm:$0xff]  }
  0x7c   : > { %3050 = vmatpush3.bf16.msra.mxu0 %v3596_v14  ;;  %2050 = vmatprep.mubr.bf16.mxu1 %v2794_v39  ;;  %v3617_v43 = vld [vmem:[#allocation5 + $0x180] sm:$0xff]   ;;  %v2810_v49 = vcombine.high %v276_v47, %v284_v48  ;;  %v3618_v50 = vld [vmem:[#allocation5 + $0x148] sm:$0xff]   ;;  %v2809_v53 = vcombine.low %v276_v47, %v284_v48  ;;  %v3625_v1 = vld [vmem:[#allocation5 + $0x190] sm:$0xff]  }
  0x7d   : > { %3108 = vmatpush3.bf16.msra.mxu1 %v3597_v15  ;;  %3051 = vmatprep.subr.bf16.mxu0 %v3598_v16  ;;  %v275_v44 = vld [vmem:[%s4051_s4 + $0x80] sm:$0xff]  ;;  %v3619_v52 = vld [vmem:[#allocation5 + $0x108] sm:$0xff]   ;;  %v3626_v3 = vld [vmem:[#allocation5 + $0x158] sm:$0xff]  }
  0x7e   : > { %3109 = vmatprep.subr.bf16.mxu1 %v3599_v17  ;;  %v283_v45 = vld [vmem:[%s4051_s4 + $0xc0] sm:$0xff]  ;;  %v3620_v54 = vld [vmem:[#allocation5 + $0x1c8] sm:$0xff]   ;;  %v3627_v5 = vld [vmem:[#allocation5 + $0x118] sm:$0xff]  }
  0x7f   : > { %v2808_v46 = vcombine.high %v275_v44, %v283_v45  ;;  %v2807_v51 = vcombine.low %v275_v44, %v283_v45  ;;  %v3621_v55 = vld [vmem:[#allocation5 + $0x188] sm:$0xff]   ;;  %v291_v57 = vld [vmem:[%s4051_s4 + $0x100] sm:$0xff]  ;;  %v3628_v12 = vld [vmem:[#allocation5 + $0x1d8] sm:$0xff]  }
  0x80   : > { %3052 = vmatpush3.bf16.msra.mxu0 %v3600_v18  ;;  %v299_v58 = vld [vmem:[%s4051_s4 + $0x140] sm:$0xff]  ;;  %v292_v59 = vld [vmem:[%s4051_s4 + $0x108] sm:$0xff]  ;;  %v3629_v13 = vld [vmem:[#allocation5 + $0x198] sm:$0xff]  }
  0x81   : > { %3110 = vmatpush3.bf16.msra.mxu1 %v3601_v19  ;;  %3053 = vmatprep.subr.bf16.mxu0 %v3602_v20  ;;  %v300_v60 = vld [vmem:[%s4051_s4 + $0x148] sm:$0xff]  ;;  %v2824_v61 = vcombine.high %v291_v57, %v299_v58  ;;  %v2823_v2 = vcombine.low %v291_v57, %v299_v58  ;;  %v307_v6 = vld [vmem:[%s4051_s4 + $0x180] sm:$0xff]  ;;  %v3646_v44 = vld [vmem:[#allocation5 + $0x178] sm:$0xff]  }
  0x82   : > { %3111 = vmatprep.subr.bf16.mxu1 %v3603_v21  ;;  %v2826_v62 = vcombine.high %v292_v59, %v300_v60  ;;  %v2825_v4 = vcombine.low %v292_v59, %v300_v60  ;;  %v315_v7 = vld [vmem:[%s4051_s4 + $0x1c0] sm:$0xff]  ;;  %v308_v8 = vld [vmem:[%s4051_s4 + $0x188] sm:$0xff]  ;;  %v3647_v45 = vld [vmem:[#allocation5 + $0x138] sm:$0xff]  }
  0x83   : > { %v2840_v9 = vcombine.high %v307_v6, %v315_v7  ;;  %v316_v10 = vld [vmem:[%s4051_s4 + $0x1c8] sm:$0xff]  ;;  %v3630_v14 = vld [vmem:[#allocation5 + $0x160] sm:$0xff]   ;;  %v2839_v16 = vcombine.low %v307_v6, %v315_v7  ;;  %v3649_v48 = vld [vmem:[#allocation5 + $0x1b8] sm:$0xff]  }
  0x84   : > { %3054 = vmatpush3.bf16.msra.mxu0 %v3604_v22  ;;  %v2842_v11 = vcombine.high %v308_v8, %v316_v10  ;;  %v3631_v15 = vld [vmem:[#allocation5 + $0x120] sm:$0xff]   ;;  %v2841_v20 = vcombine.low %v308_v8, %v316_v10  ;;  %v324_v22 = vld [vmem:[%s4051_s4 + $0x208] sm:$0xff]  ;;  %v270_v57 = vld [vmem:[%s4051_s4 + $0x58] sm:$0xff] }
  0x85   : > { %3112 = vmatpush3.bf16.msra.mxu1 %v3605_v23  ;;  %3055 = vmatprep.subr.bf16.mxu0 %v3606_v24  ;;  %v3632_v17 = vld [vmem:[#allocation5 + $0x1e0] sm:$0xff]   ;;  %v332_v23 = vld [vmem:[%s4051_s4 + $0x248] sm:$0xff] }
  0x86   : > { %3113 = vmatprep.subr.bf16.mxu1 %v3607_v25  ;;  %v323_v18 = vld [vmem:[%s4051_s4 + $0x200] sm:$0xff]  ;;  %v2858_v24 = vcombine.high %v324_v22, %v332_v23  ;;  %v340_v32 = vld [vmem:[%s4051_s4 + $0x288] sm:$0xff]  ;;  %v2857_v36 = vcombine.low %v324_v22, %v332_v23  ;;  %v3661_v23 = vld [vmem:[#allocation5 + $0x290] sm:$0xff]  }
  0x87   : > { %v331_v19 = vld [vmem:[%s4051_s4 + $0x240] sm:$0xff]  ;;  %v348_v33 = vld [vmem:[%s4051_s4 + $0x2c8] sm:$0xff] }
  0x88   : > { %3056 = vmatpush3.bf16.msra.mxu0 %v3608_v26  ;;  %v2856_v21 = vcombine.high %v323_v18, %v331_v19  ;;  %v3633_v25 = vld [vmem:[#allocation5 + $0x1a0] sm:$0xff]   ;;  %v3634_v26 = vld [vmem:[#allocation5 + $0x168] sm:$0xff]   ;;  %v2855_v34 = vcombine.low %v323_v18, %v331_v19  ;;  %v2874_v39 = vcombine.high %v340_v32, %v348_v33 }
  0x89   : > { %3114 = vmatpush3.bf16.msra.mxu1 %v3609_v27  ;;  %3057 = vmatprep.subr.bf16.mxu0 %v3610_v28  ;;  %v3635_v27 = vld [vmem:[#allocation5 + $0x128] sm:$0xff]  }
  0x8a   : > { %3115 = vmatprep.subr.bf16.mxu1 %v3611_v29  ;;  %v3636_v28 = vld [vmem:[#allocation5 + $0x1e8] sm:$0xff]  }
  0x8b   : > { %v3637_v29 = vld [vmem:[#allocation5 + $0x1a8] sm:$0xff]  }
  0x8c   : > { %3058 = vmatpush3.bf16.msra.mxu0 %v3612_v30  ;;  %v339_v30 = vld [vmem:[%s4051_s4 + $0x280] sm:$0xff]  ;;  %v3654_v8 = vld [vmem:[#allocation5 + $0x248] sm:$0xff]  }
  0x8d   : > { %3116 = vmatpush3.bf16.msra.mxu1 %v3613_v31  ;;  %3159 = vmatprep.subr.bf16.mxu0 %v3614_v40  ;;  %v347_v31 = vld [vmem:[%s4051_s4 + $0x2c0] sm:$0xff]  ;;  %v3640_v40 = vld [vmem:[#allocation5 + $0x1f0] sm:$0xff]   ;;  %v3656_v10 = vld [vmem:[#allocation5 + $0x2c8] sm:$0xff]  }
  0x8e   : > { %3217 = vmatprep.subr.bf16.mxu1 %v3616_v42  ;;  %v2872_v37 = vcombine.high %v339_v30, %v347_v31  ;;  %v355_v42 = vld [vmem:[%s4051_s4 + $0x300] sm:$0xff]  ;;  %v2871_v47 = vcombine.low %v339_v30, %v347_v31  ;;  %v318_v30 = vld [vmem:[%s4051_s4 + $0x1d8] sm:$0xff] }
  0x8f   : > { %1963 = vmatmul.mubr.bf16.vlgmr.msra.gmra.mrb[0].mxu0 %v2791_v35  ;;  %v3638_v35 = vld [vmem:[#allocation5 + $0x170] sm:$0xff]   ;;  %v2887_v58 = vcombine.low %v355_v42, %v355_v42  ;;  %v3665_v31 = vld [vmem:[#allocation5 + $0x298] sm:$0xff]  }
  0x90   : > { %2051 = vmatmul.mubr.bf16.vlgmr.msra.gmra.mrb[0].mxu1 %v2793_v38  ;;  %3160 = vmatpush3.bf16.msra.mxu0 %v3615_v41  ;;  %v3639_v38 = vld [vmem:[#allocation5 + $0x130] sm:$0xff]  }
  0x91   : > { %3218 = vmatpush3.bf16.msra.mxu1 %v3617_v43  ;;  %1970 = vmatprep.mubr.bf16.mxu0 %v2808_v46  ;;  %v3641_v41 = vld [vmem:[#allocation5 + $0x1b0] sm:$0xff]   ;;  %v356_v43 = vld [vmem:[%s4051_s4 + $0x308] sm:$0xff]  ;;  %v3648_v46 = vld [vmem:[#allocation5 + $0x1f8] sm:$0xff]  }
  0x92   : > { %2058 = vmatprep.mubr.bf16.mxu1 %v2810_v49  ;;  %3161 = vmatprep.subr.bf16.mxu0 %v3618_v50  ;;  %v2873_v49 = vcombine.low %v340_v32, %v348_v33  ;;  %v2888_v50 = vcombine.high %v355_v42, %v355_v42  ;;  %v2889_v59 = vcombine.low %v356_v43, %v356_v43  ;;  %v3666_v32 = vld [vmem:[#allocation5 + $0x260] sm:$0xff]   ;;  %v333_v42 = vld [vmem:[%s4051_s4 + $0x250] sm:$0xff] }
  0x93   : > { %3219 = vmatprep.subr.bf16.mxu1 %v3620_v54  ;;  %v261_v54 = vld [vmem:[%s4051_s4 + $0x10] sm:$0xff] }
  0x94   : > { %3162 = vmatpush3.bf16.msra.mxu0 %v3619_v52  ;;  %v3650_v52 = vld [vmem:[#allocation5 + $0x240] sm:$0xff]  }
  0x95   : > { %3220 = vmatpush3.bf16.msra.mxu1 %v3621_v55  ;;  %3163 = vmatprep.subr.bf16.mxu0 %v3622_v56  ;;  %v269_v55 = vld [vmem:[%s4051_s4 + $0x50] sm:$0xff]  ;;  %v262_v56 = vld [vmem:[%s4051_s4 + $0x18] sm:$0xff] }
  0x96   : > { %3221 = vmatprep.subr.bf16.mxu1 %v3624_v0  ;;  %v2796_v60 = vcombine.high %v261_v54, %v269_v55  ;;  %v278_v0 = vld [vmem:[%s4051_s4 + $0x98] sm:$0xff] }
  0x97   : > { %1971 = vmatmul.mubr.bf16.gmra.mrb[4].mxu0 %v2807_v51  ;;  %v2890_v51 = vcombine.high %v356_v43, %v356_v43  ;;  %v3672_v43 = vld [vmem:[#allocation5 + $0x2e8] sm:$0xff]  }
  0x98   : > { %2059 = vmatmul.mubr.bf16.gmra.mrb[4].mxu1 %v2809_v53  ;;  %1978 = vmatprep.mubr.bf16.mxu0 %v2824_v61  ;;  %v3652_v53 = vld [vmem:[#allocation5 + $0x2c0] sm:$0xff]   ;;  %v2798_v61 = vcombine.high %v262_v56, %v270_v57 }
  0x99   : > { %2066 = vmatprep.mubr.bf16.mxu1 %v2826_v62  ;;  %3164 = vmatpush3.bf16.msra.mxu0 %v3623_v63  ;;  %v277_v62 = vld [vmem:[%s4051_s4 + $0x90] sm:$0xff] }
  0x9a   : > { %3222 = vmatpush3.bf16.msra.mxu1 %v3625_v1  ;;  %3165 = vmatprep.subr.bf16.mxu0 %v3626_v3  ;;  %v285_v63 = vld [vmem:[%s4051_s4 + $0xd0] sm:$0xff]  ;;  %v2795_v1 = vcombine.low %v261_v54, %v269_v55  ;;  %v2797_v3 = vcombine.low %v262_v56, %v270_v57  ;;  %v3682_v56 = vld [vmem:[#allocation5 + $0x278] sm:$0xff]  }
  0x9b   : > { %3223 = vmatprep.subr.bf16.mxu1 %v3628_v12  ;;  %v2812_v6 = vcombine.high %v277_v62, %v285_v63  ;;  %v3658_v12 = vld [vmem:[#allocation5 + $0x250] sm:$0xff]   ;;  %v2811_v18 = vcombine.low %v277_v62, %v285_v63  ;;  %v350_v62 = vld [vmem:[%s4051_s4 + $0x2d8] sm:$0xff] }
  0x9c   : > { %v3675_v54 = vld [vmem:[#allocation5 + $0x230] sm:$0xff]   ;;  %v3685_v63 = vld [vmem:[#allocation5 + $0x2b8] sm:$0xff]  }
  0x9d   : > { %3166 = vmatpush3.bf16.msra.mxu0 %v3627_v5  ;;  %v3653_v5 = vld [vmem:[#allocation5 + $0x280] sm:$0xff]   ;;  %v3677_v55 = vld [vmem:[#allocation5 + $0x2b0] sm:$0xff]  }
  0x9e   : > { %3224 = vmatpush3.bf16.msra.mxu1 %v3629_v13  ;;  %3167 = vmatprep.subr.bf16.mxu0 %v3630_v14  ;;  %v293_v13 = vld [vmem:[%s4051_s4 + $0x110] sm:$0xff] }
  0x9f   : > { %1979 = vmatmul.mubr.bf16.gmra.mrb[8].mxu0 %v2823_v2  ;;  %3225 = vmatprep.subr.bf16.mxu1 %v3632_v17  ;;  %v286_v2 = vld [vmem:[%s4051_s4 + $0xd8] sm:$0xff]  ;;  %v301_v14 = vld [vmem:[%s4051_s4 + $0x150] sm:$0xff] }
  0xa0   : > { %2067 = vmatmul.mubr.bf16.gmra.mrb[8].mxu1 %v2825_v4  ;;  %1986 = vmatprep.mubr.bf16.mxu0 %v2840_v9  ;;  %v3651_v4 = vld [vmem:[#allocation5 + $0x200] sm:$0xff]   ;;  %v2814_v7 = vcombine.high %v278_v0, %v286_v2  ;;  %v3655_v9 = vld [vmem:[#allocation5 + $0x208] sm:$0xff]   ;;  %v3660_v17 = vld [vmem:[#allocation5 + $0x2d0] sm:$0xff]   ;;  %v2813_v19 = vcombine.low %v278_v0, %v286_v2  ;;  %v2827_v33 = vcombine.low %v293_v13, %v301_v14 }
  0xa1   : > { %2074 = vmatprep.mubr.bf16.mxu1 %v2842_v11  ;;  %3168 = vmatpush3.bf16.msra.mxu0 %v3631_v15  ;;  %v3657_v11 = vld [vmem:[#allocation5 + $0x288] sm:$0xff]   ;;  %v294_v15 = vld [vmem:[%s4051_s4 + $0x118] sm:$0xff]  ;;  %v341_v57 = vld [vmem:[%s4051_s4 + $0x290] sm:$0xff] }
  0xa2   : > { %3226 = vmatpush3.bf16.msra.mxu1 %v3633_v25  ;;  %3169 = vmatprep.subr.bf16.mxu0 %v3634_v26  ;;  %v3663_v25 = vld [vmem:[#allocation5 + $0x218] sm:$0xff]   ;;  %v309_v26 = vld [vmem:[%s4051_s4 + $0x190] sm:$0xff]  ;;  %v3686_v0 = vld [vmem:[#allocation5 + $0x340] sm:$0xff]  }
  0xa3   : > { %3227 = vmatprep.subr.bf16.mxu1 %v3636_v28  ;;  %v317_v28 = vld [vmem:[%s4051_s4 + $0x1d0] sm:$0xff]  ;;  %v3688_v2 = vld [vmem:[#allocation5 + $0x3c0] sm:$0xff]  }
  0xa5   : > { %3170 = vmatpush3.bf16.msra.mxu0 %v3635_v27  ;;  %v3664_v27 = vld [vmem:[#allocation5 + $0x2d8] sm:$0xff]  }
  0xa6   : > { %3228 = vmatpush3.bf16.msra.mxu1 %v3637_v29  ;;  %3171 = vmatprep.subr.bf16.mxu0 %v3638_v35  ;;  %v310_v29 = vld [vmem:[%s4051_s4 + $0x198] sm:$0xff] }
  0xa7   : > { %1987 = vmatmul.mubr.bf16.gmra.mrb[12].mxu0 %v2839_v16  ;;  %3229 = vmatprep.subr.bf16.mxu1 %v3640_v40  ;;  %v302_v16 = vld [vmem:[%s4051_s4 + $0x158] sm:$0xff]  ;;  %v3670_v40 = vld [vmem:[#allocation5 + $0x268] sm:$0xff]  }
  0xa8   : > { %2075 = vmatmul.mubr.bf16.gmra.mrb[12].mxu1 %v2841_v20  ;;  %1994 = vmatprep.mubr.bf16.mxu0 %v2856_v21  ;;  %v2828_v20 = vcombine.high %v293_v13, %v301_v14  ;;  %v3659_v21 = vld [vmem:[#allocation5 + $0x210] sm:$0xff]   ;;  %v2830_v22 = vcombine.high %v294_v15, %v302_v16  ;;  %v2829_v35 = vcombine.low %v294_v15, %v302_v16  ;;  %v271_v13 = vld [vmem:[%s4051_s4 + $0x60] sm:$0xff]  ;;  %v264_v14 = vld [vmem:[%s4051_s4 + $0x28] sm:$0xff] }
  0xa9   : > { %2082 = vmatprep.mubr.bf16.mxu1 %v2858_v24  ;;  %3172 = vmatpush3.bf16.msra.mxu0 %v3639_v38  ;;  %v3662_v24 = vld [vmem:[#allocation5 + $0x258] sm:$0xff]   ;;  %v2846_v38 = vcombine.high %v310_v29, %v318_v30  ;;  %v272_v15 = vld [vmem:[%s4051_s4 + $0x68] sm:$0xff] }
  0xaa   : > { %3230 = vmatpush3.bf16.msra.mxu1 %v3641_v41  ;;  %3173 = vmatprep.subr.bf16.mxu0 %v3646_v44  ;;  %v325_v41 = vld [vmem:[%s4051_s4 + $0x210] sm:$0xff]  ;;  %v326_v44 = vld [vmem:[%s4051_s4 + $0x218] sm:$0xff] }
  0xab   : > { %3231 = vmatprep.subr.bf16.mxu1 %v3648_v46  ;;  %v3671_v46 = vld [vmem:[#allocation5 + $0x228] sm:$0xff]  }
  0xad   : > { %3174 = vmatpush3.bf16.msra.mxu0 %v3647_v45  ;;  %v334_v45 = vld [vmem:[%s4051_s4 + $0x258] sm:$0xff] }
  0xae   : > { %3232 = vmatpush3.bf16.msra.mxu1 %v3649_v48  ;;  %3275 = vmatprep.subr.bf16.mxu0 %v3650_v52  ;;  %v3674_v48 = vld [vmem:[#allocation5 + $0x270] sm:$0xff]   ;;  %v2860_v52 = vcombine.high %v325_v41, %v333_v42 }
  0xaf   : > { %1995 = vmatmul.mubr.bf16.gmra.mrb[16].mxu0 %v2855_v34  ;;  %3333 = vmatprep.subr.bf16.mxu1 %v3652_v53  ;;  %v3668_v34 = vld [vmem:[#allocation5 + $0x2e0] sm:$0xff]   ;;  %v2862_v53 = vcombine.high %v326_v44, %v334_v45 }
  0xb0   : > { %2083 = vmatmul.mubr.bf16.gmra.mrb[16].mxu1 %v2857_v36  ;;  %2002 = vmatprep.mubr.bf16.mxu0 %v2872_v37  ;;  %v2844_v36 = vcombine.high %v309_v26, %v317_v28  ;;  %v3667_v37 = vld [vmem:[#allocation5 + $0x220] sm:$0xff]  }
  0xb1   : > { %2090 = vmatprep.mubr.bf16.mxu1 %v2874_v39  ;;  %v3669_v39 = vld [vmem:[#allocation5 + $0x2a0] sm:$0xff]  }
  0xb7   : > { %2003 = vmatmul.mubr.bf16.gmra.mrb[20].mxu0 %v2871_v47  ;;  %v3673_v47 = vld [vmem:[#allocation5 + $0x2a8] sm:$0xff]  }
  0xb8   : > { %2091 = vmatmul.mubr.bf16.gmra.mrb[20].mxu1 %v2873_v49  ;;  %2010 = vmatprep.mubr.bf16.mxu0 %v2888_v50  ;;  %v2843_v49 = vcombine.low %v309_v26, %v317_v28  ;;  %v3676_v50 = vld [vmem:[#allocation5 + $0x2f0] sm:$0xff]   ;;  %v2801_v26 = vcombine.low %v264_v14, %v272_v15 }
  0xb9   : > { %2098 = vmatprep.mubr.bf16.mxu1 %v2890_v51  ;;  %v2845_v51 = vcombine.low %v310_v29, %v318_v30  ;;  %v3690_v29 = vld [vmem:[#allocation5 + $0x348] sm:$0xff]  }
  0xbf   : > { %2011 = vmatmul.mubr.bf16.gmra.mrb[24].mxu0 %v2887_v58  ;;  %v3684_v58 = vld [vmem:[#allocation5 + $0x2f8] sm:$0xff]  }
  0xc0   : > { %2099 = vmatmul.mubr.bf16.gmra.mrb[24].mxu1 %v2889_v59  ;;  %2138 = vmatprep.mubr.bf16.mxu0 %v2796_v60  ;;  %v349_v59 = vld [vmem:[%s4051_s4 + $0x2d0] sm:$0xff]  ;;  %v342_v60 = vld [vmem:[%s4051_s4 + $0x298] sm:$0xff] }
  0xc1   : > { %2226 = vmatprep.mubr.bf16.mxu1 %v2798_v61  ;;  %v3683_v61 = vld [vmem:[#allocation5 + $0x238] sm:$0xff]  }
  0xc7   : > { %2139 = vmatmul.mubr.bf16.vlgmr.msra.gmra.mrb[28].mxu0 %v2795_v1  ;;  %v2859_v1 = vcombine.low %v325_v41, %v333_v42 }
  0xc8   : > { %2227 = vmatmul.mubr.bf16.vlgmr.msra.gmra.mrb[28].mxu1 %v2797_v3  ;;  %3276 = vmatpush3.bf16.msra.mxu0 %v3651_v4  ;;  %v2861_v3 = vcombine.low %v326_v44, %v334_v45  ;;  %v2876_v4 = vcombine.high %v341_v57, %v349_v59  ;;  %v3695_v44 = vld [vmem:[#allocation5 + $0x310] sm:$0xff]  }
  0xc9   : > { %3334 = vmatpush3.bf16.msra.mxu1 %v3653_v5  ;;  %2146 = vmatprep.mubr.bf16.mxu0 %v2812_v6  ;;  %v2878_v5 = vcombine.high %v342_v60, %v350_v62  ;;  %v357_v6 = vld [vmem:[%s4051_s4 + $0x310] sm:$0xff] }
  0xca   : > { %2234 = vmatprep.mubr.bf16.mxu1 %v2814_v7  ;;  %3277 = vmatprep.subr.bf16.mxu0 %v3654_v8  ;;  %v358_v7 = vld [vmem:[%s4051_s4 + $0x318] sm:$0xff]  ;;  %v2875_v8 = vcombine.low %v341_v57, %v349_v59  ;;  %v2891_v16 = vcombine.low %v357_v6, %v357_v6  ;;  %v3697_v45 = vld [vmem:[#allocation5 + $0x390] sm:$0xff]  }
  0xcb   : > { %3335 = vmatprep.subr.bf16.mxu1 %v3656_v10  ;;  %v2892_v10 = vcombine.high %v357_v6, %v357_v6  ;;  %v3710_v6 = vld [vmem:[#allocation5 + $0x370] sm:$0xff]  }
  0xcc   : > { %3278 = vmatpush3.bf16.msra.mxu0 %v3655_v9  ;;  %v2877_v9 = vcombine.low %v342_v60, %v350_v62  ;;  %v3703_v60 = vld [vmem:[#allocation5 + $0x320] sm:$0xff]   ;;  %v3706_v62 = vld [vmem:[#allocation5 + $0x368] sm:$0xff]  }
  0xcd   : > { %3336 = vmatpush3.bf16.msra.mxu1 %v3657_v11  ;;  %3279 = vmatprep.subr.bf16.mxu0 %v3658_v12  ;;  %v2894_v11 = vcombine.high %v358_v7, %v358_v7  ;;  %v263_v12 = vld [vmem:[%s4051_s4 + $0x20] sm:$0xff] }
  0xce   : > { %3337 = vmatprep.subr.bf16.mxu1 %v3660_v17  ;;  %v2893_v17 = vcombine.low %v358_v7, %v358_v7 }
  0xcf   : > { %2147 = vmatmul.mubr.bf16.gmra.mrb[32].mxu0 %v2811_v18  ;;  %v2800_v18 = vcombine.high %v263_v12, %v271_v13 }
  0xd0   : > { %2235 = vmatmul.mubr.bf16.gmra.mrb[32].mxu1 %v2813_v19  ;;  %2154 = vmatprep.mubr.bf16.mxu0 %v2828_v20  ;;  %v2802_v19 = vcombine.high %v264_v14, %v272_v15  ;;  %v279_v20 = vld [vmem:[%s4051_s4 + $0xa0] sm:$0xff]  ;;  %v3718_v14 = vld [vmem:[#allocation5 + $0x378] sm:$0xff]  }
  0xd1   : > { %2242 = vmatprep.mubr.bf16.mxu1 %v2830_v22  ;;  %3280 = vmatpush3.bf16.msra.mxu0 %v3659_v21  ;;  %v287_v21 = vld [vmem:[%s4051_s4 + $0xe0] sm:$0xff]  ;;  %v2799_v22 = vcombine.low %v263_v12, %v271_v13  ;;  %v3711_v12 = vld [vmem:[#allocation5 + $0x330] sm:$0xff]   ;;  %v3720_v15 = vld [vmem:[#allocation5 + $0x3f8] sm:$0xff]  }
  0xd2   : > { %3338 = vmatpush3.bf16.msra.mxu1 %v3661_v23  ;;  %3281 = vmatprep.subr.bf16.mxu0 %v3662_v24  ;;  %v3687_v23 = vld [vmem:[#allocation5 + $0x300] sm:$0xff]   ;;  %v280_v24 = vld [vmem:[%s4051_s4 + $0xa8] sm:$0xff]  ;;  %v2816_v28 = vcombine.high %v279_v20, %v287_v21  ;;  %v3713_v13 = vld [vmem:[#allocation5 + $0x3b0] sm:$0xff]  }
  0xd3   : > { %3339 = vmatprep.subr.bf16.mxu1 %v3664_v27  ;;  %v3689_v27 = vld [vmem:[#allocation5 + $0x380] sm:$0xff]  }
  0xd5   : > { %3282 = vmatpush3.bf16.msra.mxu0 %v3663_v25  ;;  %v288_v25 = vld [vmem:[%s4051_s4 + $0xe8] sm:$0xff] }
  0xd6   : > { %3340 = vmatpush3.bf16.msra.mxu1 %v3665_v31  ;;  %3283 = vmatprep.subr.bf16.mxu0 %v3666_v32  ;;  %v2818_v30 = vcombine.high %v280_v24, %v288_v25  ;;  %v3691_v31 = vld [vmem:[#allocation5 + $0x308] sm:$0xff]   ;;  %v2817_v41 = vcombine.low %v280_v24, %v288_v25 }
  0xd7   : > { %2155 = vmatmul.mubr.bf16.gmra.mrb[36].mxu0 %v2827_v33  ;;  %3341 = vmatprep.subr.bf16.mxu1 %v3668_v34  ;;  %v3692_v32 = vld [vmem:[#allocation5 + $0x3c8] sm:$0xff]   ;;  %v3694_v34 = vld [vmem:[#allocation5 + $0x350] sm:$0xff]  }
  0xd8   : > { %2243 = vmatmul.mubr.bf16.gmra.mrb[36].mxu1 %v2829_v35  ;;  %2162 = vmatprep.mubr.bf16.mxu0 %v2844_v36  ;;  %v3693_v33 = vld [vmem:[#allocation5 + $0x388] sm:$0xff]   ;;  %v295_v35 = vld [vmem:[%s4051_s4 + $0x120] sm:$0xff] }
  0xd9   : > { %2250 = vmatprep.mubr.bf16.mxu1 %v2846_v38  ;;  %3284 = vmatpush3.bf16.msra.mxu0 %v3667_v37  ;;  %v303_v36 = vld [vmem:[%s4051_s4 + $0x160] sm:$0xff]  ;;  %v296_v37 = vld [vmem:[%s4051_s4 + $0x128] sm:$0xff] }
  0xda   : > { %3342 = vmatpush3.bf16.msra.mxu1 %v3669_v39  ;;  %3285 = vmatprep.subr.bf16.mxu0 %v3670_v40  ;;  %v304_v38 = vld [vmem:[%s4051_s4 + $0x168] sm:$0xff]  ;;  %v3696_v39 = vld [vmem:[#allocation5 + $0x3d0] sm:$0xff]   ;;  %v2815_v40 = vcombine.low %v279_v20, %v287_v21  ;;  %v2832_v42 = vcombine.high %v295_v35, %v303_v36  ;;  %v3721_v21 = vld [vmem:[#allocation5 + $0x3b8] sm:$0xff]  }
  0xdb   : > { %3343 = vmatprep.subr.bf16.mxu1 %v3672_v43  ;;  %v2834_v43 = vcombine.high %v296_v37, %v304_v38  ;;  %v2833_v57 = vcombine.low %v296_v37, %v304_v38  ;;  %v352_v20 = vld [vmem:[%s4051_s4 + $0x2e8] sm:$0xff] }
  0xdd   : > { %3286 = vmatpush3.bf16.msra.mxu0 %v3671_v46  ;;  %v3698_v46 = vld [vmem:[#allocation5 + $0x358] sm:$0xff]  }
  0xde   : > { %3344 = vmatpush3.bf16.msra.mxu1 %v3673_v47  ;;  %3287 = vmatprep.subr.bf16.mxu0 %v3674_v48  ;;  %v3700_v47 = vld [vmem:[#allocation5 + $0x3d8] sm:$0xff]  }
  0xdf   : > { %2163 = vmatmul.mubr.bf16.gmra.mrb[40].mxu0 %v2843_v49  ;;  %3345 = vmatprep.subr.bf16.mxu1 %v3676_v50  ;;  %v3699_v48 = vld [vmem:[#allocation5 + $0x318] sm:$0xff]   ;;  %v311_v49 = vld [vmem:[%s4051_s4 + $0x1a0] sm:$0xff] }
  0xe0   : > { %2251 = vmatmul.mubr.bf16.gmra.mrb[40].mxu1 %v2845_v51  ;;  %2170 = vmatprep.mubr.bf16.mxu0 %v2860_v52  ;;  %v319_v50 = vld [vmem:[%s4051_s4 + $0x1e0] sm:$0xff]  ;;  %v312_v51 = vld [vmem:[%s4051_s4 + $0x1a8] sm:$0xff] }
  0xe1   : > { %2258 = vmatprep.mubr.bf16.mxu1 %v2862_v53  ;;  %3288 = vmatpush3.bf16.msra.mxu0 %v3675_v54  ;;  %v320_v52 = vld [vmem:[%s4051_s4 + $0x1e8] sm:$0xff]  ;;  %v3701_v53 = vld [vmem:[#allocation5 + $0x398] sm:$0xff]   ;;  %v3702_v54 = vld [vmem:[#allocation5 + $0x360] sm:$0xff]   ;;  %v2847_v7 = vcombine.low %v311_v49, %v319_v50 }
  0xe2   : > { %3346 = vmatpush3.bf16.msra.mxu1 %v3677_v55  ;;  %3289 = vmatprep.subr.bf16.mxu0 %v3682_v56  ;;  %v2831_v55 = vcombine.low %v295_v35, %v303_v36  ;;  %v3704_v56 = vld [vmem:[#allocation5 + $0x3e0] sm:$0xff]   ;;  %v2850_v59 = vcombine.high %v312_v51, %v320_v52  ;;  %v274_v35 = vld [vmem:[%s4051_s4 + $0x78] sm:$0xff] }
  0xe3   : > { %3347 = vmatprep.subr.bf16.mxu1 %v3684_v58  ;;  %v2848_v58 = vcombine.high %v311_v49, %v319_v50  ;;  %v305_v49 = vld [vmem:[%s4051_s4 + $0x170] sm:$0xff]  ;;  %v298_v50 = vld [vmem:[%s4051_s4 + $0x138] sm:$0xff] }
  0xe5   : > { %3290 = vmatpush3.bf16.msra.mxu0 %v3683_v61  ;;  %v3705_v61 = vld [vmem:[#allocation5 + $0x3a0] sm:$0xff]  }
  0xe6   : > { %3348 = vmatpush3.bf16.msra.mxu1 %v3685_v63  ;;  %3391 = vmatprep.subr.bf16.mxu0 %v3686_v0  ;;  %v3708_v63 = vld [vmem:[#allocation5 + $0x3e8] sm:$0xff]   ;;  %v327_v0 = vld [vmem:[%s4051_s4 + $0x220] sm:$0xff] }
  0xe7   : > { %2171 = vmatmul.mubr.bf16.gmra.mrb[44].mxu0 %v2859_v1  ;;  %3449 = vmatprep.subr.bf16.mxu1 %v3688_v2  ;;  %v335_v1 = vld [vmem:[%s4051_s4 + $0x260] sm:$0xff]  ;;  %v328_v2 = vld [vmem:[%s4051_s4 + $0x228] sm:$0xff] }
  0xe8   : > { %2259 = vmatmul.mubr.bf16.gmra.mrb[44].mxu1 %v2861_v3  ;;  %2178 = vmatprep.mubr.bf16.mxu0 %v2876_v4  ;;  %v3707_v3 = vld [vmem:[#allocation5 + $0x328] sm:$0xff]  }
  0xe9   : > { %2266 = vmatprep.mubr.bf16.mxu1 %v2878_v5  ;;  %v336_v4 = vld [vmem:[%s4051_s4 + $0x268] sm:$0xff] }
  0xea   : > { %v3709_v5 = vld [vmem:[#allocation5 + $0x3a8] sm:$0xff]  }
  0xef   : > { %2179 = vmatmul.mubr.bf16.gmra.mrb[48].mxu0 %v2875_v8  ;;  %v3712_v8 = vld [vmem:[#allocation5 + $0x3f0] sm:$0xff]  }
  0xf0   : > { %2267 = vmatmul.mubr.bf16.gmra.mrb[48].mxu1 %v2877_v9  ;;  %2186 = vmatprep.mubr.bf16.mxu0 %v2892_v10  ;;  %v2849_v9 = vcombine.low %v312_v51, %v320_v52  ;;  %v2864_v10 = vcombine.high %v327_v0, %v335_v1  ;;  %v306_v51 = vld [vmem:[%s4051_s4 + $0x178] sm:$0xff] }
  0xf1   : > { %2274 = vmatprep.mubr.bf16.mxu1 %v2894_v11  ;;  %v2866_v11 = vcombine.high %v328_v2, %v336_v4 }
  0xf7   : > { %2187 = vmatmul.mubr.bf16.gmra.mrb[52].mxu0 %v2891_v16  ;;  %v343_v16 = vld [vmem:[%s4051_s4 + $0x2a0] sm:$0xff] }
  0xf8   : > { %2275 = vmatmul.mubr.bf16.gmra.mrb[52].mxu1 %v2893_v17  ;;  %2314 = vmatprep.mubr.bf16.mxu0 %v2800_v18  ;;  %v351_v17 = vld [vmem:[%s4051_s4 + $0x2e0] sm:$0xff]  ;;  %v3719_v18 = vld [vmem:[#allocation5 + $0x338] sm:$0xff]  }
  0xf9   : > { %2402 = vmatprep.mubr.bf16.mxu1 %v2802_v19  ;;  %v344_v19 = vld [vmem:[%s4051_s4 + $0x2a8] sm:$0xff]  ;;  %v2880_v24 = vcombine.high %v343_v16, %v351_v17 }
  0xfa   : > { %v2882_v25 = vcombine.high %v344_v19, %v352_v20 }
  0xff   : > { %2315 = vmatmul.mubr.bf16.vlgmr.msra.gmra.mrb[56].mxu0 %v2799_v22  ;;  %v2863_v22 = vcombine.low %v327_v0, %v335_v1  ;;  %v329_v0 = vld [vmem:[%s4051_s4 + $0x230] sm:$0xff] }
 0x100   : > { %2403 = vmatmul.mubr.bf16.vlgmr.msra.gmra.mrb[56].mxu1 %v2801_v26  ;;  %3392 = vmatpush3.bf16.msra.mxu0 %v3687_v23  ;;  %v2865_v23 = vcombine.low %v328_v2, %v336_v4  ;;  %v359_v26 = vld [vmem:[%s4051_s4 + $0x320] sm:$0xff]  ;;  %v337_v1 = vld [vmem:[%s4051_s4 + $0x270] sm:$0xff]  ;;  %v330_v2 = vld [vmem:[%s4051_s4 + $0x238] sm:$0xff] }
 0x101   : > { %3450 = vmatpush3.bf16.msra.mxu1 %v3689_v27  ;;  %2322 = vmatprep.mubr.bf16.mxu0 %v2816_v28  ;;  %v360_v27 = vld [vmem:[%s4051_s4 + $0x328] sm:$0xff]  ;;  %v2879_v28 = vcombine.low %v343_v16, %v351_v17  ;;  %v2895_v36 = vcombine.low %v359_v26, %v359_v26  ;;  %v361_v16 = vld [vmem:[%s4051_s4 + $0x330] sm:$0xff]  ;;  %v362_v17 = vld [vmem:[%s4051_s4 + $0x338] sm:$0xff] }
 0x102   : > { %2410 = vmatprep.mubr.bf16.mxu1 %v2818_v30  ;;  %3393 = vmatprep.subr.bf16.mxu0 %v3690_v29  ;;  %v2881_v29 = vcombine.low %v344_v19, %v352_v20  ;;  %v2896_v30 = vcombine.high %v359_v26, %v359_v26  ;;  %v2897_v37 = vcombine.low %v360_v27, %v360_v27 }
 0x103   : > { %3451 = vmatprep.subr.bf16.mxu1 %v3692_v32  ;;  %v265_v32 = vld [vmem:[%s4051_s4 + $0x30] sm:$0xff]  ;;  %v2900_v20 = vcombine.high %v361_v16, %v361_v16  ;;  %v2899_v26 = vcombine.low %v361_v16, %v361_v16 }
 0x104   : > { %3394 = vmatpush3.bf16.msra.mxu0 %v3691_v31  ;;  %v2898_v31 = vcombine.high %v360_v27, %v360_v27 }
 0x105   : > { %3452 = vmatpush3.bf16.msra.mxu1 %v3693_v33  ;;  %3395 = vmatprep.subr.bf16.mxu0 %v3694_v34  ;;  %v273_v33 = vld [vmem:[%s4051_s4 + $0x70] sm:$0xff]  ;;  %v266_v34 = vld [vmem:[%s4051_s4 + $0x38] sm:$0xff] }
 0x106   : > { %3453 = vmatprep.subr.bf16.mxu1 %v3696_v39  ;;  %v2804_v38 = vcombine.high %v265_v32, %v273_v33  ;;  %v2806_v39 = vcombine.high %v266_v34, %v274_v35 }
 0x107   : > { %2323 = vmatmul.mubr.bf16.gmra.mrb[60].mxu0 %v2815_v40  ;;  %v281_v40 = vld [vmem:[%s4051_s4 + $0xb0] sm:$0xff] }
 0x108   : > { %2411 = vmatmul.mubr.bf16.gmra.mrb[60].mxu1 %v2817_v41  ;;  %2330 = vmatprep.mubr.bf16.mxu0 %v2832_v42  ;;  %v289_v41 = vld [vmem:[%s4051_s4 + $0xf0] sm:$0xff]  ;;  %v282_v42 = vld [vmem:[%s4051_s4 + $0xb8] sm:$0xff] }
 0x109   : > { %2418 = vmatprep.mubr.bf16.mxu1 %v2834_v43  ;;  %3396 = vmatpush3.bf16.msra.mxu0 %v3695_v44  ;;  %v290_v43 = vld [vmem:[%s4051_s4 + $0xf8] sm:$0xff]  ;;  %v2803_v44 = vcombine.low %v265_v32, %v273_v33  ;;  %v2819_v52 = vcombine.low %v281_v40, %v289_v41 }
 0x10a   : > { %3454 = vmatpush3.bf16.msra.mxu1 %v3697_v45  ;;  %3397 = vmatprep.subr.bf16.mxu0 %v3698_v46  ;;  %v2805_v45 = vcombine.low %v266_v34, %v274_v35  ;;  %v2820_v46 = vcombine.high %v281_v40, %v289_v41 }
 0x10b   : > { %3455 = vmatprep.subr.bf16.mxu1 %v3700_v47  ;;  %v2822_v47 = vcombine.high %v282_v42, %v290_v43 }
 0x10d   : > { %3398 = vmatpush3.bf16.msra.mxu0 %v3699_v48  ;;  %v297_v48 = vld [vmem:[%s4051_s4 + $0x130] sm:$0xff] }
 0x10e   : > { %3456 = vmatpush3.bf16.msra.mxu1 %v3701_v53  ;;  %3399 = vmatprep.subr.bf16.mxu0 %v3702_v54  ;;  %v2821_v53 = vcombine.low %v282_v42, %v290_v43  ;;  %v2836_v54 = vcombine.high %v297_v48, %v305_v49 }
 0x10f   : > { %2331 = vmatmul.mubr.bf16.gmra.mrb[64].mxu0 %v2831_v55  ;;  %3457 = vmatprep.subr.bf16.mxu1 %v3704_v56  ;;  %v2838_v55 = vcombine.high %v298_v50, %v306_v51  ;;  %v313_v56 = vld [vmem:[%s4051_s4 + $0x1b0] sm:$0xff] }
 0x110   : > { %2419 = vmatmul.mubr.bf16.gmra.mrb[64].mxu1 %v2833_v57  ;;  %2338 = vmatprep.mubr.bf16.mxu0 %v2848_v58  ;;  %v321_v57 = vld [vmem:[%s4051_s4 + $0x1f0] sm:$0xff]  ;;  %v314_v58 = vld [vmem:[%s4051_s4 + $0x1b8] sm:$0xff] }
 0x111   : > { %2426 = vmatprep.mubr.bf16.mxu1 %v2850_v59  ;;  %3400 = vmatpush3.bf16.msra.mxu0 %v3703_v60  ;;  %v322_v59 = vld [vmem:[%s4051_s4 + $0x1f8] sm:$0xff]  ;;  %v2835_v60 = vcombine.low %v297_v48, %v305_v49  ;;  %v2851_v4 = vcombine.low %v313_v56, %v321_v57 }
 0x112   : > { %3458 = vmatpush3.bf16.msra.mxu1 %v3705_v61  ;;  %3401 = vmatprep.subr.bf16.mxu0 %v3706_v62  ;;  %v2837_v61 = vcombine.low %v298_v50, %v306_v51  ;;  %v2852_v62 = vcombine.high %v313_v56, %v321_v57 }
 0x113   : > { %3459 = vmatprep.subr.bf16.mxu1 %v3708_v63  ;;  %v2854_v63 = vcombine.high %v314_v58, %v322_v59 }
 0x115   : > { %3402 = vmatpush3.bf16.msra.mxu0 %v3707_v3  ;;  %v338_v3 = vld [vmem:[%s4051_s4 + $0x278] sm:$0xff] }
 0x116   : > { %3460 = vmatpush3.bf16.msra.mxu1 %v3709_v5  ;;  %3403 = vmatprep.subr.bf16.mxu0 %v3710_v6  ;;  %v2853_v5 = vcombine.low %v314_v58, %v322_v59  ;;  %v2868_v6 = vcombine.high %v329_v0, %v337_v1 }
 0x117   : > { %2339 = vmatmul.mubr.bf16.gmra.mrb[68].mxu0 %v2847_v7  ;;  %3461 = vmatprep.subr.bf16.mxu1 %v3712_v8  ;;  %v2870_v7 = vcombine.high %v330_v2, %v338_v3  ;;  %v345_v8 = vld [vmem:[%s4051_s4 + $0x2b0] sm:$0xff] }
 0x118   : > { %2427 = vmatmul.mubr.bf16.gmra.mrb[68].mxu1 %v2849_v9  ;;  %2346 = vmatprep.mubr.bf16.mxu0 %v2864_v10  ;;  %v353_v9 = vld [vmem:[%s4051_s4 + $0x2f0] sm:$0xff]  ;;  %v346_v10 = vld [vmem:[%s4051_s4 + $0x2b8] sm:$0xff] }
 0x119   : > { %2434 = vmatprep.mubr.bf16.mxu1 %v2866_v11  ;;  %3404 = vmatpush3.bf16.msra.mxu0 %v3711_v12  ;;  %v354_v11 = vld [vmem:[%s4051_s4 + $0x2f8] sm:$0xff]  ;;  %v2867_v12 = vcombine.low %v329_v0, %v337_v1 }
 0x11a   : > { %3462 = vmatpush3.bf16.msra.mxu1 %v3713_v13  ;;  %3405 = vmatprep.subr.bf16.mxu0 %v3718_v14  ;;  %v2869_v13 = vcombine.low %v330_v2, %v338_v3  ;;  %v2884_v14 = vcombine.high %v345_v8, %v353_v9  ;;  %v2885_v19 = vcombine.low %v346_v10, %v354_v11 }
 0x11b   : > { %3463 = vmatprep.subr.bf16.mxu1 %v3720_v15  ;;  %v2886_v15 = vcombine.high %v346_v10, %v354_v11 }
 0x11d   : > { %3406 = vmatpush3.bf16.msra.mxu0 %v3719_v18  ;;  %v2883_v18 = vcombine.low %v345_v8, %v353_v9 }
 0x11e   : > { %3464 = vmatpush3.bf16.msra.mxu1 %v3721_v21  ;;  %v2902_v21 = vcombine.high %v362_v17, %v362_v17 }
 0x11f   : > { %2347 = vmatmul.mubr.bf16.gmra.mrb[72].mxu0 %v2863_v22 }
 0x120   : > { %2435 = vmatmul.mubr.bf16.gmra.mrb[72].mxu1 %v2865_v23  ;;  %2354 = vmatprep.mubr.bf16.mxu0 %v2880_v24  ;;  %v4168_v24 = vld [vmem:[%s4386_s2] ss:$0 sm:$0xff] }
 0x121   : > { %2442 = vmatprep.mubr.bf16.mxu1 %v2882_v25 }
 0x127   : > { %2355 = vmatmul.mubr.bf16.gmra.mrb[76].mxu0 %v2879_v28 }
 0x128   : > { %2443 = vmatmul.mubr.bf16.gmra.mrb[76].mxu1 %v2881_v29  ;;  %2362 = vmatprep.mubr.bf16.mxu0 %v2896_v30  ;;  %v2901_v30 = vcombine.low %v362_v17, %v362_v17 }
 0x129   : > { %2450 = vmatprep.mubr.bf16.mxu1 %v2898_v31 }
 0x12f   : > { %2363 = vmatmul.mubr.bf16.gmra.mrb[80].mxu0 %v2895_v36 }
 0x130   : > { %2451 = vmatmul.mubr.bf16.gmra.mrb[80].mxu1 %v2897_v37  ;;  %2490 = vmatprep.mubr.bf16.mxu0 %v2804_v38 }
 0x131   : > { %2578 = vmatprep.mubr.bf16.mxu1 %v2806_v39 }
 0x137   : > { %2491 = vmatmul.mubr.bf16.vlgmr.msra.gmra.mrb[84].mxu0 %v2803_v44 }
 0x138   : > { %2579 = vmatmul.mubr.bf16.vlgmr.msra.gmra.mrb[84].mxu1 %v2805_v45  ;;  %2498 = vmatprep.mubr.bf16.mxu0 %v2820_v46 }
 0x139   : > { %2586 = vmatprep.mubr.bf16.mxu1 %v2822_v47 }
 0x13f   : > { %2499 = vmatmul.mubr.bf16.gmra.mrb[88].mxu0 %v2819_v52 }
 0x140   : > { %2587 = vmatmul.mubr.bf16.gmra.mrb[88].mxu1 %v2821_v53  ;;  %2506 = vmatprep.mubr.bf16.mxu0 %v2836_v54 }
 0x141   : > { %2594 = vmatprep.mubr.bf16.mxu1 %v2838_v55 }
 0x147   : > { %2507 = vmatmul.mubr.bf16.gmra.mrb[92].mxu0 %v2835_v60 }
 0x148   : > { %2595 = vmatmul.mubr.bf16.gmra.mrb[92].mxu1 %v2837_v61  ;;  %2514 = vmatprep.mubr.bf16.mxu0 %v2852_v62 }
 0x149   : > { %2602 = vmatprep.mubr.bf16.mxu1 %v2854_v63 }
 0x14f   : > { %2515 = vmatmul.mubr.bf16.gmra.mrb[96].mxu0 %v2851_v4 }
 0x150   : > { %2603 = vmatmul.mubr.bf16.gmra.mrb[96].mxu1 %v2853_v5  ;;  %2522 = vmatprep.mubr.bf16.mxu0 %v2868_v6 }
 0x151   : > { %2610 = vmatprep.mubr.bf16.mxu1 %v2870_v7 }
 0x157   : > { %2523 = vmatmul.mubr.bf16.gmra.mrb[100].mxu0 %v2867_v12 }
 0x158   : > { %2611 = vmatmul.mubr.bf16.gmra.mrb[100].mxu1 %v2869_v13  ;;  %2530 = vmatprep.mubr.bf16.mxu0 %v2884_v14 }
 0x159   : > { %2618 = vmatprep.mubr.bf16.mxu1 %v2886_v15 }
 0x15f   : > { %2531 = vmatmul.mubr.bf16.gmra.mrb[104].mxu0 %v2883_v18 }
 0x160   : > { %2619 = vmatmul.mubr.bf16.gmra.mrb[104].mxu1 %v2885_v19  ;;  %2538 = vmatprep.mubr.bf16.mxu0 %v2900_v20 }
 0x161   : > { %2626 = vmatprep.mubr.bf16.mxu1 %v2902_v21 }
 0x162   : > { %v3059_v22 = vpop.f32.mrb[0].mxu0 }
 0x163   : > { %v3117_v23 = vpop.f32.mrb[0].mxu1  ;;  %v3060_v25 = vpop.f32.mrb[1].mxu0 }
 0x164   : > { %v3061_v27 = vadd.f32 %v3060_v25, %v3059_v22  ;;  %v3118_v28 = vpop.f32.mrb[1].mxu1  ;;  %v3062_v29 = vpop.f32.mrb[2].mxu0 }
 0x165   : > { %v3119_v31 = vadd.f32 %v3118_v28, %v3117_v23  ;;  %v3120_v32 = vpop.f32.mrb[2].mxu1  ;;  %v3063_v33 = vpop.f32.mrb[3].mxu0 }
 0x166   : > { %v1965_v34 = vadd.f32 %v3061_v27, %v4168_v24  ;;  %v3064_v35 = vadd.f32 %v3063_v33, %v3062_v29  ;;  %v3121_v36 = vpop.f32.mrb[3].mxu1 }
 0x167   : > { %v3122_v37 = vadd.f32 %v3121_v36, %v3120_v32  ;;  %2539 = vmatmul.mubr.bf16.gmra.mrb[108].mxu0 %v2899_v26 }
 0x168   : > { %v4171_v38 = vadd.f32 %v3119_v31, %v1965_v34  ;;  %v1968_v39 = vadd.f32 %v3064_v35, %v4168_v24  ;;  %2627 = vmatmul.mubr.bf16.gmra.mrb[108].mxu1 %v2901_v30 }
 0x16a   : > { %v4174_v40 = vadd.f32 %v3122_v37, %v1968_v39  ;;  %v3065_v41 = vpop.f32.mrb[4].mxu0 }
 0x16b   : > { %v3123_v42 = vpop.f32.mrb[4].mxu1  ;;  %v3066_v43 = vpop.f32.mrb[5].mxu0 }
 0x16c   : > { %v3067_v44 = vadd.f32 %v3066_v43, %v3065_v41  ;;  %v3124_v45 = vpop.f32.mrb[5].mxu1  ;;  %v3068_v46 = vpop.f32.mrb[6].mxu0 }
 0x16d   : > { %v3125_v47 = vadd.f32 %v3124_v45, %v3123_v42  ;;  %v3126_v48 = vpop.f32.mrb[6].mxu1  ;;  %v3069_v49 = vpop.f32.mrb[7].mxu0 }
 0x16e   : > { %v1973_v50 = vadd.f32 %v3067_v44, %v4168_v24  ;;  %v3070_v51 = vadd.f32 %v3069_v49, %v3068_v46  ;;  %v3127_v52 = vpop.f32.mrb[7].mxu1 }
 0x16f   : > { %v3128_v53 = vadd.f32 %v3127_v52, %v3126_v48 }
 0x170   : > { %v4177_v54 = vadd.f32 %v3125_v47, %v1973_v50  ;;  %v1976_v55 = vadd.f32 %v3070_v51, %v4168_v24 }
 0x172   : > { %v4180_v56 = vadd.f32 %v3128_v53, %v1976_v55  ;;  %v3071_v57 = vpop.f32.mrb[8].mxu0 }
 0x173   : > { %v3129_v58 = vpop.f32.mrb[8].mxu1  ;;  %v3072_v59 = vpop.f32.mrb[9].mxu0 }
 0x174   : > { %v3073_v60 = vadd.f32 %v3072_v59, %v3071_v57  ;;  %v3130_v61 = vpop.f32.mrb[9].mxu1  ;;  %v3074_v62 = vpop.f32.mrb[10].mxu0 }
 0x175   : > { %v3131_v63 = vadd.f32 %v3130_v61, %v3129_v58  ;;  %v3132_v0 = vpop.f32.mrb[10].mxu1  ;;  %v3075_v1 = vpop.f32.mrb[11].mxu0 }
 0x176   : > { %v1981_v2 = vadd.f32 %v3073_v60, %v4168_v24  ;;  %v3076_v3 = vadd.f32 %v3075_v1, %v3074_v62  ;;  %v3133_v4 = vpop.f32.mrb[11].mxu1 }
 0x177   : > { %v3134_v5 = vadd.f32 %v3133_v4, %v3132_v0 }
 0x178   : > { %v4183_v6 = vadd.f32 %v3131_v63, %v1981_v2  ;;  %v1984_v7 = vadd.f32 %v3076_v3, %v4168_v24 }
 0x17a   : > { %v4186_v8 = vadd.f32 %v3134_v5, %v1984_v7  ;;  %v3077_v9 = vpop.f32.mrb[12].mxu0 }
 0x17b   : > { %v3135_v10 = vpop.f32.mrb[12].mxu1  ;;  %v3078_v11 = vpop.f32.mrb[13].mxu0 }
 0x17c   : > { %v3079_v12 = vadd.f32 %v3078_v11, %v3077_v9  ;;  %v3136_v13 = vpop.f32.mrb[13].mxu1  ;;  %v3080_v14 = vpop.f32.mrb[14].mxu0 }
 0x17d   : > { %v3137_v15 = vadd.f32 %v3136_v13, %v3135_v10  ;;  %v3138_v16 = vpop.f32.mrb[14].mxu1  ;;  %v3081_v17 = vpop.f32.mrb[15].mxu0 }
 0x17e   : > { %v1989_v18 = vadd.f32 %v3079_v12, %v4168_v24  ;;  %v3082_v19 = vadd.f32 %v3081_v17, %v3080_v14  ;;  %v3139_v20 = vpop.f32.mrb[15].mxu1 }
 0x17f   : > { %v3140_v21 = vadd.f32 %v3139_v20, %v3138_v16 }
 0x180   : > { %v4189_v22 = vadd.f32 %v3137_v15, %v1989_v18  ;;  %v1992_v23 = vadd.f32 %v3082_v19, %v4168_v24 }
 0x182   : > { %v4192_v25 = vadd.f32 %v3140_v21, %v1992_v23  ;;  %v3083_v26 = vpop.f32.mrb[16].mxu0 }
 0x183   : > { %v3141_v27 = vpop.f32.mrb[16].mxu1  ;;  %v3084_v28 = vpop.f32.mrb[17].mxu0 }
 0x184   : > { %v3085_v29 = vadd.f32 %v3084_v28, %v3083_v26  ;;  %v3142_v30 = vpop.f32.mrb[17].mxu1  ;;  %v3086_v31 = vpop.f32.mrb[18].mxu0 }
 0x185   : > { %v3143_v32 = vadd.f32 %v3142_v30, %v3141_v27  ;;  %v3144_v33 = vpop.f32.mrb[18].mxu1  ;;  %v3087_v34 = vpop.f32.mrb[19].mxu0 }
 0x186   : > { %v1997_v35 = vadd.f32 %v3085_v29, %v4168_v24  ;;  %v3088_v36 = vadd.f32 %v3087_v34, %v3086_v31  ;;  %v3145_v37 = vpop.f32.mrb[19].mxu1 }
 0x187   : > { %v3146_v39 = vadd.f32 %v3145_v37, %v3144_v33 }
 0x188   : > { %v4195_v41 = vadd.f32 %v3143_v32, %v1997_v35  ;;  %v2000_v42 = vadd.f32 %v3088_v36, %v4168_v24 }
 0x18a   : > { %v4198_v43 = vadd.f32 %v3146_v39, %v2000_v42  ;;  %v3089_v44 = vpop.f32.mrb[20].mxu0 }
 0x18b   : > { %v3147_v45 = vpop.f32.mrb[20].mxu1  ;;  %v3090_v46 = vpop.f32.mrb[21].mxu0 }
 0x18c   : > { %v3091_v47 = vadd.f32 %v3090_v46, %v3089_v44  ;;  %v3148_v48 = vpop.f32.mrb[21].mxu1  ;;  %v3092_v49 = vpop.f32.mrb[22].mxu0 }
 0x18d   : > { %v3149_v50 = vadd.f32 %v3148_v48, %v3147_v45  ;;  %v3150_v51 = vpop.f32.mrb[22].mxu1  ;;  %v3093_v52 = vpop.f32.mrb[23].mxu0 }
 0x18e   : > { %v2005_v53 = vadd.f32 %v3091_v47, %v4168_v24  ;;  %v3094_v55 = vadd.f32 %v3093_v52, %v3092_v49  ;;  %v3151_v57 = vpop.f32.mrb[23].mxu1 }
 0x18f   : > { %v3152_v58 = vadd.f32 %v3151_v57, %v3150_v51 }
 0x190   : > { %v4201_v59 = vadd.f32 %v3149_v50, %v2005_v53  ;;  %v2008_v60 = vadd.f32 %v3094_v55, %v4168_v24 }
 0x192   : > { %v4204_v61 = vadd.f32 %v3152_v58, %v2008_v60  ;;  %v3095_v62 = vpop.f32.mrb[24].mxu0 }
 0x193   : > { %v3153_v63 = vpop.f32.mrb[24].mxu1  ;;  %v3096_v0 = vpop.f32.mrb[25].mxu0 }
 0x194   : > { %v3097_v1 = vadd.f32 %v3096_v0, %v3095_v62  ;;  %v3154_v2 = vpop.f32.mrb[25].mxu1  ;;  %v3098_v3 = vpop.f32.mrb[26].mxu0 }
 0x195   : > { %v3155_v4 = vadd.f32 %v3154_v2, %v3153_v63  ;;  %v3156_v5 = vpop.f32.mrb[26].mxu1  ;;  %v3099_v7 = vpop.f32.mrb[27].mxu0 }
 0x196   : > { %v2013_v9 = vadd.f32 %v3097_v1, %v4168_v24  ;;  %v3157_v10 = vpop.f32.mrb[27].mxu1 }
 0x198   : > { %v4207_v11 = vadd.f32 %v3155_v4, %v2013_v9 }
 0x19a   : > { %v3175_v12 = vpop.f32.mrb[28].mxu0 }
 0x19b   : > { %v3233_v13 = vpop.f32.mrb[28].mxu1  ;;  %v3176_v14 = vpop.f32.mrb[29].mxu0 }
 0x19c   : > { %v3177_v15 = vadd.f32 %v3176_v14, %v3175_v12  ;;  %v3234_v16 = vpop.f32.mrb[29].mxu1  ;;  %v3178_v17 = vpop.f32.mrb[30].mxu0 }
 0x19d   : > { %v3235_v18 = vadd.f32 %v3234_v16, %v3233_v13  ;;  %v3236_v19 = vpop.f32.mrb[30].mxu1  ;;  %v3179_v20 = vpop.f32.mrb[31].mxu0 }
 0x19e   : > { %v2141_v21 = vadd.f32 %v3177_v15, %v4171_v38  ;;  %v3180_v23 = vadd.f32 %v3179_v20, %v3178_v17  ;;  %v3237_v26 = vpop.f32.mrb[31].mxu1 }
 0x19f   : > { %v3238_v27 = vadd.f32 %v3237_v26, %v3236_v19 }
 0x1a0   : > { %v4210_v28 = vadd.f32 %v3235_v18, %v2141_v21  ;;  %v2144_v24 = vadd.f32 %v3180_v23, %v4174_v40 }
 0x1a2   : > { %v4213_v29 = vadd.f32 %v3238_v27, %v2144_v24  ;;  %v3181_v30 = vpop.f32.mrb[32].mxu0 }
 0x1a3   : > { %v3239_v31 = vpop.f32.mrb[32].mxu1  ;;  %v3182_v32 = vpop.f32.mrb[33].mxu0 }
 0x1a4   : > { %v3183_v33 = vadd.f32 %v3182_v32, %v3181_v30  ;;  %v3240_v34 = vpop.f32.mrb[33].mxu1  ;;  %v3184_v35 = vpop.f32.mrb[34].mxu0 }
 0x1a5   : > { %v3241_v36 = vadd.f32 %v3240_v34, %v3239_v31  ;;  %v3242_v37 = vpop.f32.mrb[34].mxu1  ;;  %v3185_v39 = vpop.f32.mrb[35].mxu0 }
 0x1a6   : > { %v2149_v38 = vadd.f32 %v3183_v33, %v4177_v54  ;;  %v3186_v42 = vadd.f32 %v3185_v39, %v3184_v35  ;;  %v3243_v44 = vpop.f32.mrb[35].mxu1 }
 0x1a7   : > { %v3244_v45 = vadd.f32 %v3243_v44, %v3242_v37 }
 0x1a8   : > { %v4216_v46 = vadd.f32 %v3241_v36, %v2149_v38  ;;  %v2152_v40 = vadd.f32 %v3186_v42, %v4180_v56 }
 0x1aa   : > { %v4219_v47 = vadd.f32 %v3244_v45, %v2152_v40  ;;  %v3187_v48 = vpop.f32.mrb[36].mxu0 }
 0x1ab   : > { %v3245_v49 = vpop.f32.mrb[36].mxu1  ;;  %v3188_v50 = vpop.f32.mrb[37].mxu0 }
 0x1ac   : > { %v3189_v51 = vadd.f32 %v3188_v50, %v3187_v48  ;;  %v3246_v52 = vpop.f32.mrb[37].mxu1  ;;  %v3190_v53 = vpop.f32.mrb[38].mxu0 }
 0x1ad   : > { %v3247_v55 = vadd.f32 %v3246_v52, %v3245_v49  ;;  %v3248_v57 = vpop.f32.mrb[38].mxu1  ;;  %v3191_v58 = vpop.f32.mrb[39].mxu0 }
 0x1ae   : > { %v2157_v54 = vadd.f32 %v3189_v51, %v4183_v6  ;;  %v3192_v60 = vadd.f32 %v3191_v58, %v3190_v53  ;;  %v3249_v62 = vpop.f32.mrb[39].mxu1 }
 0x1af   : > { %v3250_v63 = vadd.f32 %v3249_v62, %v3248_v57 }
 0x1b0   : > { %v4222_v0 = vadd.f32 %v3247_v55, %v2157_v54  ;;  %v2160_v56 = vadd.f32 %v3192_v60, %v4186_v8 }
 0x1b2   : > { %v4225_v1 = vadd.f32 %v3250_v63, %v2160_v56  ;;  %v3193_v2 = vpop.f32.mrb[40].mxu0 }
 0x1b3   : > { %v3251_v3 = vpop.f32.mrb[40].mxu1  ;;  %v3194_v4 = vpop.f32.mrb[41].mxu0 }
 0x1b4   : > { %v3195_v5 = vadd.f32 %v3194_v4, %v3193_v2  ;;  %v3252_v7 = vpop.f32.mrb[41].mxu1  ;;  %v3196_v9 = vpop.f32.mrb[42].mxu0 }
 0x1b5   : > { %v3253_v10 = vadd.f32 %v3252_v7, %v3251_v3  ;;  %v3254_v12 = vpop.f32.mrb[42].mxu1  ;;  %v3197_v13 = vpop.f32.mrb[43].mxu0 }
 0x1b6   : > { %v2165_v6 = vadd.f32 %v3195_v5, %v4189_v22  ;;  %v3198_v14 = vadd.f32 %v3197_v13, %v3196_v9  ;;  %v3255_v15 = vpop.f32.mrb[43].mxu1 }
 0x1b7   : > { %v3256_v16 = vadd.f32 %v3255_v15, %v3254_v12 }
 0x1b8   : > { %v4228_v17 = vadd.f32 %v3253_v10, %v2165_v6  ;;  %v2168_v8 = vadd.f32 %v3198_v14, %v4192_v25 }
 0x1ba   : > { %v4231_v18 = vadd.f32 %v3256_v16, %v2168_v8  ;;  %v3199_v19 = vpop.f32.mrb[44].mxu0 }
 0x1bb   : > { %v3257_v20 = vpop.f32.mrb[44].mxu1  ;;  %v3200_v21 = vpop.f32.mrb[45].mxu0 }
 0x1bc   : > { %v3201_v23 = vadd.f32 %v3200_v21, %v3199_v19  ;;  %v3258_v26 = vpop.f32.mrb[45].mxu1  ;;  %v3202_v27 = vpop.f32.mrb[46].mxu0 }
 0x1bd   : > { %v3259_v24 = vadd.f32 %v3258_v26, %v3257_v20  ;;  %v3260_v30 = vpop.f32.mrb[46].mxu1  ;;  %v3203_v31 = vpop.f32.mrb[47].mxu0 }
 0x1be   : > { %v2173_v22 = vadd.f32 %v3201_v23, %v4195_v41  ;;  %v3204_v32 = vadd.f32 %v3203_v31, %v3202_v27  ;;  %v3261_v33 = vpop.f32.mrb[47].mxu1 }
 0x1bf   : > { %v3262_v34 = vadd.f32 %v3261_v33, %v3260_v30 }
 0x1c0   : > { %v4234_v35 = vadd.f32 %v3259_v24, %v2173_v22  ;;  %v2176_v25 = vadd.f32 %v3204_v32, %v4198_v43 }
 0x1c2   : > { %v4237_v36 = vadd.f32 %v3262_v34, %v2176_v25  ;;  %v3205_v37 = vpop.f32.mrb[48].mxu0 }
 0x1c3   : > { %v3263_v39 = vpop.f32.mrb[48].mxu1  ;;  %v3206_v38 = vpop.f32.mrb[49].mxu0 }
 0x1c4   : > { %v3207_v42 = vadd.f32 %v3206_v38, %v3205_v37  ;;  %v3264_v44 = vpop.f32.mrb[49].mxu1  ;;  %v3208_v45 = vpop.f32.mrb[50].mxu0 }
 0x1c5   : > { %v3265_v40 = vadd.f32 %v3264_v44, %v3263_v39  ;;  %v3266_v48 = vpop.f32.mrb[50].mxu1  ;;  %v3209_v49 = vpop.f32.mrb[51].mxu0 }
 0x1c6   : > { %v2181_v41 = vadd.f32 %v3207_v42, %v4201_v59  ;;  %v3210_v50 = vadd.f32 %v3209_v49, %v3208_v45  ;;  %v3267_v51 = vpop.f32.mrb[51].mxu1 }
 0x1c7   : > { %v3268_v52 = vadd.f32 %v3267_v51, %v3266_v48 }
 0x1c8   : > { %v4240_v53 = vadd.f32 %v3265_v40, %v2181_v41  ;;  %v2184_v43 = vadd.f32 %v3210_v50, %v4204_v61 }
 0x1ca   : > { %v4243_v55 = vadd.f32 %v3268_v52, %v2184_v43  ;;  %v3211_v57 = vpop.f32.mrb[52].mxu0 }
 0x1cb   : > { %v3269_v58 = vpop.f32.mrb[52].mxu1  ;;  %v3212_v54 = vpop.f32.mrb[53].mxu0 }
 0x1cc   : > { %v3213_v60 = vadd.f32 %v3212_v54, %v3211_v57  ;;  %v3270_v62 = vpop.f32.mrb[53].mxu1  ;;  %v3214_v63 = vpop.f32.mrb[54].mxu0 }
 0x1cd   : > { %v3271_v56 = vadd.f32 %v3270_v62, %v3269_v58  ;;  %v3272_v2 = vpop.f32.mrb[54].mxu1  ;;  %v3215_v3 = vpop.f32.mrb[55].mxu0 }
 0x1ce   : > { %v2189_v59 = vadd.f32 %v3213_v60, %v4207_v11  ;;  %v3273_v4 = vpop.f32.mrb[55].mxu1 }
 0x1d0   : > { %v4246_v5 = vadd.f32 %v3271_v56, %v2189_v59 }
 0x1d2   : > { %v3291_v7 = vpop.f32.mrb[56].mxu0 }
 0x1d3   : > { %v3349_v9 = vpop.f32.mrb[56].mxu1  ;;  %v3292_v10 = vpop.f32.mrb[57].mxu0 }
 0x1d4   : > { %v3293_v61 = vadd.f32 %v3292_v10, %v3291_v7  ;;  %v3350_v12 = vpop.f32.mrb[57].mxu1  ;;  %v3294_v13 = vpop.f32.mrb[58].mxu0 }
 0x1d5   : > { %v3351_v6 = vadd.f32 %v3350_v12, %v3349_v9  ;;  %v3352_v14 = vpop.f32.mrb[58].mxu1  ;;  %v3295_v15 = vpop.f32.mrb[59].mxu0 }
 0x1d6   : > { %v2317_v16 = vadd.f32 %v3293_v61, %v4210_v28  ;;  %v3296_v8 = vadd.f32 %v3295_v15, %v3294_v13  ;;  %v3353_v19 = vpop.f32.mrb[59].mxu1 }
 0x1d7   : > { %v3354_v20 = vadd.f32 %v3353_v19, %v3352_v14 }
 0x1d8   : > { %v4249_v21 = vadd.f32 %v3351_v6, %v2317_v16  ;;  %v2320_v11 = vadd.f32 %v3296_v8, %v4213_v29 }
 0x1da   : > { %v4252_v23 = vadd.f32 %v3354_v20, %v2320_v11  ;;  %v3297_v26 = vpop.f32.mrb[60].mxu0 }
 0x1db   : > { %v3355_v27 = vpop.f32.mrb[60].mxu1  ;;  %v3298_v24 = vpop.f32.mrb[61].mxu0 }
 0x1dc   : > { %v3299_v30 = vadd.f32 %v3298_v24, %v3297_v26  ;;  %v3356_v31 = vpop.f32.mrb[61].mxu1  ;;  %v3300_v22 = vpop.f32.mrb[62].mxu0 }
 0x1dd   : > { %v3357_v32 = vadd.f32 %v3356_v31, %v3355_v27  ;;  %v3358_v33 = vpop.f32.mrb[62].mxu1  ;;  %v3301_v34 = vpop.f32.mrb[63].mxu0 }
 0x1de   : > { %v2325_v28 = vadd.f32 %v3299_v30, %v4216_v46  ;;  %v3302_v25 = vadd.f32 %v3301_v34, %v3300_v22  ;;  %v3359_v37 = vpop.f32.mrb[63].mxu1 }
 0x1df   : > { %v3360_v39 = vadd.f32 %v3359_v37, %v3358_v33 }
 0x1e0   : > { %v4255_v38 = vadd.f32 %v3357_v32, %v2325_v28  ;;  %v2328_v29 = vadd.f32 %v3302_v25, %v4219_v47 }
 0x1e2   : > { %v4258_v42 = vadd.f32 %v3360_v39, %v2328_v29  ;;  %v3303_v44 = vpop.f32.mrb[64].mxu0 }
 0x1e3   : > { %v3361_v45 = vpop.f32.mrb[64].mxu1  ;;  %v3304_v40 = vpop.f32.mrb[65].mxu0 }
 0x1e4   : > { %v3305_v48 = vadd.f32 %v3304_v40, %v3303_v44  ;;  %v3362_v49 = vpop.f32.mrb[65].mxu1  ;;  %v3306_v41 = vpop.f32.mrb[66].mxu0 }
 0x1e5   : > { %v3363_v50 = vadd.f32 %v3362_v49, %v3361_v45  ;;  %v3364_v51 = vpop.f32.mrb[66].mxu1  ;;  %v3307_v52 = vpop.f32.mrb[67].mxu0 }
 0x1e6   : > { %v2333_v46 = vadd.f32 %v3305_v48, %v4222_v0  ;;  %v3308_v43 = vadd.f32 %v3307_v52, %v3306_v41  ;;  %v3365_v57 = vpop.f32.mrb[67].mxu1 }
 0x1e7   : > { %v3366_v58 = vadd.f32 %v3365_v57, %v3364_v51 }
 0x1e8   : > { %v4261_v54 = vadd.f32 %v3363_v50, %v2333_v46  ;;  %v2336_v47 = vadd.f32 %v3308_v43, %v4225_v1 }
 0x1ea   : > { %v4264_v60 = vadd.f32 %v3366_v58, %v2336_v47  ;;  %v3309_v62 = vpop.f32.mrb[68].mxu0 }
 0x1eb   : > { %v3367_v63 = vpop.f32.mrb[68].mxu1  ;;  %v3310_v56 = vpop.f32.mrb[69].mxu0 }
 0x1ec   : > { %v3311_v2 = vadd.f32 %v3310_v56, %v3309_v62  ;;  %v3368_v3 = vpop.f32.mrb[69].mxu1  ;;  %v3312_v59 = vpop.f32.mrb[70].mxu0 }
 0x1ed   : > { %v3369_v4 = vadd.f32 %v3368_v3, %v3367_v63  ;;  %v3370_v7 = vpop.f32.mrb[70].mxu1  ;;  %v3313_v9 = vpop.f32.mrb[71].mxu0 }
 0x1ee   : > { %v2341_v0 = vadd.f32 %v3311_v2, %v4228_v17  ;;  %v3314_v10 = vadd.f32 %v3313_v9, %v3312_v59  ;;  %v3371_v61 = vpop.f32.mrb[71].mxu1 }
 0x1ef   : > { %v3372_v12 = vadd.f32 %v3371_v61, %v3370_v7 }
 0x1f0   : > { %v4267_v13 = vadd.f32 %v3369_v4, %v2341_v0  ;;  %v2344_v1 = vadd.f32 %v3314_v10, %v4231_v18 }
 0x1f2   : > { %v4270_v6 = vadd.f32 %v3372_v12, %v2344_v1  ;;  %v3315_v14 = vpop.f32.mrb[72].mxu0 }
 0x1f3   : > { %v3373_v15 = vpop.f32.mrb[72].mxu1  ;;  %v3316_v16 = vpop.f32.mrb[73].mxu0 }
 0x1f4   : > { %v3317_v8 = vadd.f32 %v3316_v16, %v3315_v14  ;;  %v3374_v19 = vpop.f32.mrb[73].mxu1  ;;  %v3318_v20 = vpop.f32.mrb[74].mxu0 }
 0x1f5   : > { %v3375_v11 = vadd.f32 %v3374_v19, %v3373_v15  ;;  %v3376_v26 = vpop.f32.mrb[74].mxu1  ;;  %v3319_v27 = vpop.f32.mrb[75].mxu0 }
 0x1f6   : > { %v2349_v17 = vadd.f32 %v3317_v8, %v4234_v35  ;;  %v3320_v24 = vadd.f32 %v3319_v27, %v3318_v20  ;;  %v3377_v30 = vpop.f32.mrb[75].mxu1 }
 0x1f7   : > { %v3378_v31 = vadd.f32 %v3377_v30, %v3376_v26 }
 0x1f8   : > { %v4273_v22 = vadd.f32 %v3375_v11, %v2349_v17  ;;  %v2352_v18 = vadd.f32 %v3320_v24, %v4237_v36 }
 0x1fa   : > { %v4276_v32 = vadd.f32 %v3378_v31, %v2352_v18  ;;  %v3321_v33 = vpop.f32.mrb[76].mxu0 }
 0x1fb   : > { %v3379_v34 = vpop.f32.mrb[76].mxu1  ;;  %v3322_v28 = vpop.f32.mrb[77].mxu0 }
 0x1fc   : > { %v3323_v25 = vadd.f32 %v3322_v28, %v3321_v33  ;;  %v3380_v37 = vpop.f32.mrb[77].mxu1  ;;  %v3324_v39 = vpop.f32.mrb[78].mxu0 }
 0x1fd   : > { %v3381_v29 = vadd.f32 %v3380_v37, %v3379_v34  ;;  %v3382_v44 = vpop.f32.mrb[78].mxu1  ;;  %v3325_v45 = vpop.f32.mrb[79].mxu0 }
 0x1fe   : > { %v2357_v35 = vadd.f32 %v3323_v25, %v4240_v53  ;;  %v3326_v40 = vadd.f32 %v3325_v45, %v3324_v39  ;;  %v3383_v48 = vpop.f32.mrb[79].mxu1 }
 0x1ff   : > { %v3384_v49 = vadd.f32 %v3383_v48, %v3382_v44 }
 0x200   : > { %v4279_v41 = vadd.f32 %v3381_v29, %v2357_v35  ;;  %v2360_v36 = vadd.f32 %v3326_v40, %v4243_v55 }
 0x202   : > { %v4282_v50 = vadd.f32 %v3384_v49, %v2360_v36  ;;  %v3327_v51 = vpop.f32.mrb[80].mxu0 }
 0x203   : > { %v3385_v52 = vpop.f32.mrb[80].mxu1  ;;  %v3328_v46 = vpop.f32.mrb[81].mxu0 }
 0x204   : > { %v3329_v43 = vadd.f32 %v3328_v46, %v3327_v51  ;;  %v3386_v57 = vpop.f32.mrb[81].mxu1  ;;  %v3330_v58 = vpop.f32.mrb[82].mxu0 }
 0x205   : > { %v3387_v47 = vadd.f32 %v3386_v57, %v3385_v52  ;;  %v3388_v62 = vpop.f32.mrb[82].mxu1  ;;  %v3331_v63 = vpop.f32.mrb[83].mxu0 }
 0x206   : > { %v2365_v53 = vadd.f32 %v3329_v43, %v4246_v5  ;;  %v3389_v56 = vpop.f32.mrb[83].mxu1 }
 0x208   : > { %v4285_v2 = vadd.f32 %v3387_v47, %v2365_v53 }
 0x20a   : > { %v3407_v3 = vpop.f32.mrb[84].mxu0 }
 0x20b   : > { %v3465_v59 = vpop.f32.mrb[84].mxu1  ;;  %v3408_v55 = vpop.f32.mrb[85].mxu0 }
 0x20c   : > { %v3409_v4 = vadd.f32 %v3408_v55, %v3407_v3  ;;  %v3466_v7 = vpop.f32.mrb[85].mxu1  ;;  %v3410_v9 = vpop.f32.mrb[86].mxu0 }
 0x20d   : > { %v3467_v0 = vadd.f32 %v3466_v7, %v3465_v59  ;;  %v3468_v10 = vpop.f32.mrb[86].mxu1  ;;  %v3411_v61 = vpop.f32.mrb[87].mxu0 }
 0x20e   : > { %v2493_v12 = vadd.f32 %v3409_v4, %v4249_v21  ;;  %v3412_v1 = vadd.f32 %v3411_v61, %v3410_v9  ;;  %v3469_v14 = vpop.f32.mrb[87].mxu1 }
 0x20f   : > { %v3470_v15 = vadd.f32 %v3469_v14, %v3468_v10 }
 0x210   : > { %v2581_v16 = vadd.f32 %v3467_v0, %v2493_v12  ;;  %v2496_v5 = vadd.f32 %v3412_v1, %v4252_v23 }
 0x212   : > { %2634 = vst [vmem:[%s4290_s5] sm:$0xff] %v2581_v16  ;;  %v2584_v8 = vadd.f32 %v3470_v15, %v2496_v5  ;;  %v3413_v19 = vpop.f32.mrb[88].mxu0 }
 0x213   : > { %v3471_v20 = vpop.f32.mrb[88].mxu1  ;;  %v3414_v11 = vpop.f32.mrb[89].mxu0 }
 0x214   : > { %2635 = vst [vmem:[%s4290_s5 + $0x8] sm:$0xff] %v2584_v8  ;;  %v3415_v26 = vadd.f32 %v3414_v11, %v3413_v19  ;;  %v3472_v27 = vpop.f32.mrb[89].mxu1  ;;  %v3416_v21 = vpop.f32.mrb[90].mxu0 }
 0x215   : > { %v3473_v17 = vadd.f32 %v3472_v27, %v3471_v20  ;;  %v3474_v24 = vpop.f32.mrb[90].mxu1  ;;  %v3417_v30 = vpop.f32.mrb[91].mxu0 }
 0x216   : > { %v2501_v23 = vadd.f32 %v3415_v26, %v4255_v38  ;;  %v3418_v31 = vadd.f32 %v3417_v30, %v3416_v21  ;;  %v3475_v18 = vpop.f32.mrb[91].mxu1 }
 0x217   : > { %v3476_v33 = vadd.f32 %v3475_v18, %v3474_v24 }
 0x218   : > { %v2589_v34 = vadd.f32 %v3473_v17, %v2501_v23  ;;  %v2504_v28 = vadd.f32 %v3418_v31, %v4258_v42 }
 0x21a   : > { %2636 = vst [vmem:[%s4290_s5 + $0x10] sm:$0xff] %v2589_v34  ;;  %v2592_v25 = vadd.f32 %v3476_v33, %v2504_v28  ;;  %v3419_v37 = vpop.f32.mrb[92].mxu0 }
 0x21b   : > { %v3477_v39 = vpop.f32.mrb[92].mxu1  ;;  %v3420_v29 = vpop.f32.mrb[93].mxu0 }
 0x21c   : > { %2637 = vst [vmem:[%s4290_s5 + $0x18] sm:$0xff] %v2592_v25  ;;  %v3421_v44 = vadd.f32 %v3420_v29, %v3419_v37  ;;  %v3478_v45 = vpop.f32.mrb[93].mxu1  ;;  %v3422_v35 = vpop.f32.mrb[94].mxu0 }
 0x21d   : > { %v3479_v40 = vadd.f32 %v3478_v45, %v3477_v39  ;;  %v3480_v48 = vpop.f32.mrb[94].mxu1  ;;  %v3423_v38 = vpop.f32.mrb[95].mxu0 }
 0x21e   : > { %v2509_v49 = vadd.f32 %v3421_v44, %v4261_v54  ;;  %v3424_v36 = vadd.f32 %v3423_v38, %v3422_v35  ;;  %v3481_v51 = vpop.f32.mrb[95].mxu1 }
 0x21f   : > { %v3482_v52 = vadd.f32 %v3481_v51, %v3480_v48 }
 0x220   : > { %v2597_v42 = vadd.f32 %v3479_v40, %v2509_v49  ;;  %v2512_v46 = vadd.f32 %v3424_v36, %v4264_v60 }
 0x222   : > { %2638 = vst [vmem:[%s4290_s5 + $0x20] sm:$0xff] %v2597_v42  ;;  %v2600_v43 = vadd.f32 %v3482_v52, %v2512_v46  ;;  %v3425_v57 = vpop.f32.mrb[96].mxu0 }
 0x223   : > { %v3483_v58 = vpop.f32.mrb[96].mxu1  ;;  %v3426_v47 = vpop.f32.mrb[97].mxu0 }
 0x224   : > { %2639 = vst [vmem:[%s4290_s5 + $0x28] sm:$0xff] %v2600_v43  ;;  %v3427_v62 = vadd.f32 %v3426_v47, %v3425_v57  ;;  %v3484_v63 = vpop.f32.mrb[97].mxu1  ;;  %v3428_v53 = vpop.f32.mrb[98].mxu0 }
 0x225   : > { %v3485_v56 = vadd.f32 %v3484_v63, %v3483_v58  ;;  %v3486_v3 = vpop.f32.mrb[98].mxu1  ;;  %v3429_v54 = vpop.f32.mrb[99].mxu0 }
 0x226   : > { %v2517_v59 = vadd.f32 %v3427_v62, %v4267_v13  ;;  %v3430_v55 = vadd.f32 %v3429_v54, %v3428_v53  ;;  %v3487_v4 = vpop.f32.mrb[99].mxu1 }
 0x227   : > { %v3488_v7 = vadd.f32 %v3487_v4, %v3486_v3 }
 0x228   : > { %v2605_v60 = vadd.f32 %v3485_v56, %v2517_v59  ;;  %v2520_v9 = vadd.f32 %v3430_v55, %v4270_v6 }
 0x22a   : > { %2640 = vst [vmem:[%s4290_s5 + $0x30] sm:$0xff] %v2605_v60  ;;  %v2608_v0 = vadd.f32 %v3488_v7, %v2520_v9  ;;  %v3431_v10 = vpop.f32.mrb[100].mxu0 }
 0x22b   : > { %v3489_v61 = vpop.f32.mrb[100].mxu1  ;;  %v3432_v12 = vpop.f32.mrb[101].mxu0 }
 0x22c   : > { %2641 = vst [vmem:[%s4290_s5 + $0x38] sm:$0xff] %v2608_v0  ;;  %v3433_v1 = vadd.f32 %v3432_v12, %v3431_v10  ;;  %v3490_v14 = vpop.f32.mrb[101].mxu1  ;;  %v3434_v15 = vpop.f32.mrb[102].mxu0 }
 0x22d   : > { %v3491_v16 = vadd.f32 %v3490_v14, %v3489_v61  ;;  %v3492_v5 = vpop.f32.mrb[102].mxu1  ;;  %v3435_v13 = vpop.f32.mrb[103].mxu0 }
 0x22e   : > { %v2525_v8 = vadd.f32 %v3433_v1, %v4273_v22  ;;  %v3436_v19 = vadd.f32 %v3435_v13, %v3434_v15  ;;  %v3493_v20 = vpop.f32.mrb[103].mxu1 }
 0x22f   : > { %v3494_v11 = vadd.f32 %v3493_v20, %v3492_v5 }
 0x230   : > { %v2613_v6 = vadd.f32 %v3491_v16, %v2525_v8  ;;  %v2528_v26 = vadd.f32 %v3436_v19, %v4276_v32 }
 0x232   : > { %2642 = vst [vmem:[%s4290_s5 + $0x40] sm:$0xff] %v2613_v6  ;;  %v2616_v27 = vadd.f32 %v3494_v11, %v2528_v26  ;;  %v3437_v21 = vpop.f32.mrb[104].mxu0 }
 0x233   : > { %v3495_v17 = vpop.f32.mrb[104].mxu1  ;;  %v3438_v24 = vpop.f32.mrb[105].mxu0 }
 0x234   : > { %2643 = vst [vmem:[%s4290_s5 + $0x48] sm:$0xff] %v2616_v27  ;;  %v3439_v30 = vadd.f32 %v3438_v24, %v3437_v21  ;;  %v3496_v23 = vpop.f32.mrb[105].mxu1  ;;  %v3440_v31 = vpop.f32.mrb[106].mxu0 }
 0x235   : > { %v3497_v18 = vadd.f32 %v3496_v23, %v3495_v17  ;;  %v3498_v33 = vpop.f32.mrb[106].mxu1  ;;  %v3441_v22 = vpop.f32.mrb[107].mxu0 }
 0x236   : > { %v2533_v34 = vadd.f32 %v3439_v30, %v4279_v41  ;;  %v3442_v28 = vadd.f32 %v3441_v22, %v3440_v31  ;;  %v3499_v25 = vpop.f32.mrb[107].mxu1 }
 0x237   : > { %v3500_v37 = vadd.f32 %v3499_v25, %v3498_v33 }
 0x238   : > { %v2621_v32 = vadd.f32 %v3497_v18, %v2533_v34  ;;  %v2536_v39 = vadd.f32 %v3442_v28, %v4282_v50 }
 0x23a   : > { %2644 = vst [vmem:[%s4290_s5 + $0x50] sm:$0xff] %v2621_v32  ;;  %v2624_v29 = vadd.f32 %v3500_v37, %v2536_v39  ;;  %v3443_v44 = vpop.f32.mrb[108].mxu0 }
 0x23b   : > { %v3501_v45 = vpop.f32.mrb[108].mxu1  ;;  %v3444_v35 = vpop.f32.mrb[109].mxu0 }
 0x23c   : > { %2645 = vst [vmem:[%s4290_s5 + $0x58] sm:$0xff] %v2624_v29  ;;  %v3445_v40 = vadd.f32 %v3444_v35, %v3443_v44  ;;  %v3502_v48 = vpop.f32.mrb[109].mxu1  ;;  %v3446_v38 = vpop.f32.mrb[110].mxu0  ;;  %2654 = sbr.rel (!%p4403_p10) target bundleno = 607 (0x25f), region = 44 }
 0x23d   : > { %v3503_v49 = vadd.f32 %v3502_v48, %v3501_v45  ;;  %v3504_v36 = vpop.f32.mrb[110].mxu1  ;;  %v3447_v41 = vpop.f32.mrb[111].mxu0 }
 0x23e   : > { %v2541_v51 = vadd.f32 %v3445_v40, %v4285_v2  ;;  %v3505_v52 = vpop.f32.mrb[111].mxu1 }
 0x240   : > { %v2629_v42 = vadd.f32 %v3503_v49, %v2541_v51 }
 0x242   : > { %2646 = vst [vmem:[%s4290_s5 + $0x60] sm:$0xff] %v2629_v42 }
 0x243   : > { %s4415_s30 = smov (!%p2657_p12, %s2656_s30), 13 }
 0x244   : > { %s4320_s18 = sshll.u32 %s4415_s30, 7 }
 0x245   : > { %s2661_s22 = ssub.s32 1664, %s4320_s18 }
 0x246   : > { %2662 = vsyncadd %s2648_s11, %s2661_s22  ;;  %p3032_p13 = scmp.ne.s32.totalorder %s4320_s18, 0  ;;  %s3041_s26 = smul.u32 1664, %s3860_s15 }
 0x247   : > { %s2668_s21 = sshll.u32 %s4290_s5, 4  ;;  %s3876_s10 = smov [#allocation7]   ;;  %s4333_s21 = int_to_ptr.vmem [resolvable:$true] %s2668_s21 }
 0x248   : > { %s4331_s7 = scalar_lea.hbm %s4387_s3, %s3041_s26  ;;  %s3782_s9 = scalar_lea.vmem %s4333_s21, %s4320_s18 }
 0x249   : > { %p3783_p1 = scmp.ne.s32.totalorder %s4333_s21, %s3782_s9  ;;  %s3786_s4 = sshll.u32 %s3876_s10, 4  ;;  %s3787_s4 = int_to_ptr.vmem [resolvable:$false] %s3786_s4 }
 0x24a   : > { %s3788_s15 = scalar_lea.vmem %s3787_s4, 3328  ;;  %p3789_p8 = scmp.lt.s32.totalorder %s4333_s21, %s3787_s4 }
 0x24b   : > { %p3784_p11 = pnand %p3783_p1, %p3032_p13  ;;  %p3790_p9 = scmp.lt.s32.totalorder %s3788_s15, %s3782_s9 }
 0x24d   : > { %p3785_p4 = pneg %p3784_p11  ;;  %p3791_p2 = por %p3790_p9, %p3789_p8 }
 0x24f   : > { %p3792_p6 = pnand %p3791_p2, %p3785_p4 }
 0x251   : > { %3795 = shalt.err (!%p3792_p6)
}
 0x252   : > { %s3796_s23 = scalar_lea.hbm %s4331_s7, %s4320_s18  ;;  %s3800_s5 = scalar_lea.hbm %s4387_s3, 3200 }
 0x253   : > { %p3797_p0 = scmp.ne.s32.totalorder %s4331_s7, %s3796_s23  ;;  %p3801_p10 = scmp.lt.u32.totalorder %s4331_s7, %s4387_s3 }
 0x254   : > { %p3802_p12 = scmp.lt.u32.totalorder %s3800_s5, %s3796_s23  ;;  %p3804_p11 = scmp.lt.u32.totalorder %s3796_s23, %s4331_s7 }
 0x255   : > { %p3798_p7 = pnand %p3797_p0, %p3032_p13 }
 0x256   : > { %p3803_p1 = por %p3802_p12, %p3801_p10 }
 0x257   : > { %p3799_p5 = pneg %p3798_p7 }
 0x258   : > { %p3805_p4 = por %p3804_p11, %p3803_p1 }
 0x25a   : > { %p3806_p8 = pnand %p3805_p4, %p3799_p5 }
 0x25c   : > { %3809 = shalt.err (!%p3806_p8)
}
 0x25d   : > { %s3877_s22 = smov 128   ;;  %s3878_s26 = smov 8  }
 0x25e   : > { %2674 = dma.vmem_to_hbm [thread:$0]  (%p3032_p13), %s4333_s21, %s4320_s18, %s4331_s7, %s2648_s11, %s3877_s22, %s3877_s22, %s3878_s26  }
 0x25f PF: > { %s2683_s24 = sand.u32 1, %s3848_s12   ;;  %p4404_p9 = scmp.ne.s32.totalorder %s4396_s28, 0 }
 0x260   : > { %s2684_s6 = scalar_lea.sflag [#allocation4], %s2683_s24 }
 0x261   : > { %p3521_p2 = pnand %p2780_p3, %p4404_p9 }
 0x263   : > { %3843 = dma.done.wait (!%p3521_p2), %s2684_s6, 1664  }
 0x264   : > { %3845 = vsyncadd (!%p3521_p2), %s2684_s6, 4294965632  ;;  %s20_s17 = sadd.s32 1, %s3868_s17   ;;  %s4405_s12 = smov %s3852_s13 }
 0x265   : > { %p17_p6 = scmp.ge.s32.totalorder %s20_s17, 4   ;;  %s4406_s13 = smov %s3856_s14 }
 0x266   : > { %s4407_s14 = smov %s3961_s27  ;;  %s4408_s15 = smov %s3864_s16 }
 0x267   : > { %s4409_s16 = smov %s4411_s20  ;;  %19 = sbr.rel (!%p17_p6) target bundleno = 7 (0x7), region = 85 }
 0x26e   :  { %2689 = vsyncpa [#allocation3], 1 }
 0x26f   :  { %2691 = vsyncpa [#allocation3 + $0x1], 1 }
 0x270   :  { %2692 = vsyncpa [#allocation6], 1 }
 0x271   :  { %2693 = vsyncpa [#allocation4], 1 }
 0x272   :  { %2695 = vsyncpa [#allocation4 + $0x1], 1 }

</bundles_post_ra>
